<compile_context>
chip_gen: v7x
topology: tpu7x:2x2x1
jax: 0.10.0
libtpu: 0.0.40
codegen_flags: <defaults>
</compile_context>

<pallas_src>
import functools
import math

import jax
import jax.numpy as jnp
from jax import lax
from jax.experimental import pallas as pl
from jax.experimental.pallas import tpu as pltpu


_K_PACK_TARGET = 512  # max contraction depth per packed MXU matmul


def _cdiv(a, b):
    return -(-a // b)


def _round_up(a, b):
    return _cdiv(a, b) * b


def _pair(v):
    if isinstance(v, (tuple, list)):
        return tuple(v)
    return (v, v)


def circular_pad(x, pad=0):
    """Wrap-around (circular) padding of the two spatial dims of NCHW x.

    pad: int or (pad_azimuth, pad_elevation); azimuth = last dim (W),
    elevation = second-to-last dim (H).
    """
    # TODO(synk): surfify's circular_pad may treat the elevation/pole axis
    # specially; plain circular wrap on both spatial dims is used here.
    if isinstance(pad, (tuple, list)):
        pad_az, pad_el = pad
    else:
        pad_az = pad_el = pad
    if pad_az == 0 and pad_el == 0:
        return x
    return jnp.pad(
        x, ((0, 0), (0, 0), (pad_el, pad_el), (pad_az, pad_az)), mode="wrap")


def _vmem_limit_bytes():
    """Generation-aware VMEM limit with headroom for compiler scratch."""
    cap = 64 * 1024 * 1024  # conservative fallback (v7x per-core physical)
    try:
        info = pltpu.get_tpu_info()
        cap = int(getattr(info, "vmem_capacity_bytes", cap))
    except Exception:  # query unavailable -> keep the conservative fallback
        pass
    # ~48 MiB on v7x (64 MiB physical), ~96 MiB on v5e/v6e (128 MiB physical).
    return min(cap * 3 // 4, 112 * 1024 * 1024)


def _pick_row_tile(ho, wo_p, wq, c, phases, oi_max, ktot, fp,
                   cbytes, obytes, budget):
    """Largest multiple-of-8 output-row tile whose per-step footprint fits."""
    lane_c = _round_up(c, 128)                   # VMEM lane padding of channels
    sub_wq = _round_up(wq, 8 * (4 // cbytes))    # sublane padding of width
    in_row = phases * sub_wq * lane_c * cbytes   # input bytes / hq row (1 buf)
    out_row = wo_p * fp * obytes                 # output bytes / out row (1 buf)
    lhs_row = wo_p * min(ktot * c, _K_PACK_TARGET) * cbytes
    acc_row = wo_p * fp * 4
    fixed = (ktot * c * fp * cbytes              # weights
             + 2 * fp * 4                        # bias
             + 2 * oi_max * in_row)              # halo rows (double buffered)
    per_row = 2 * in_row + 2 * out_row + lhs_row + acc_row
    rows = (budget - fixed) // max(per_row, 1)
    tho = max(8, (rows // 8) * 8)
    return int(min(tho, 256, _round_up(ho, 8)))


def _conv_tile_kernel(x_ref, w_ref, b_ref, o_ref, *, kh, kw, sh, sw,
                      pack_target):
    """One (batch, row-tile) grid step: stride-phased input -> conv output.

    x_ref: (sh*sw, thq, wq, C)   compute dtype, stride phases (+ halo rows)
    w_ref: (kh*kw*C, Fp)         compute dtype, tap-major then channel
    b_ref: (1, Fp)               float32
    o_ref: (tho, wo_p, Fp)       output dtype (lane-dense Fp stores)
    """
    c = x_ref.shape[-1]
    tho, wo_p, fp = o_ref.shape
    m = tho * wo_p

    # Fused im2col of this tile in VMEM: every conv tap is a contiguous static
    # slice of one stride phase; (tho, wo_p, C) -> (M, C) is a leading-dim
    # collapse (free because wo_p is a sublane-tile multiple).
    taps = []
    for ki in range(kh):
        pi, oi = ki % sh, ki // sh
        for kj in range(kw):
            pj, oj = kj % sw, kj // sw
            xt = x_ref[pi * sw + pj, oi:oi + tho, oj:oj + wo_p, :]
            taps.append(xt.reshape(m, c))

    # K-pack taps so each MXU matmul contracts over kh*kw*C (grouped when C is
    # large), instead of kh*kw under-filled K=C matmuls. pack_target == 0
    # degrades to per-tap accumulation (always lowers).
    ktot = kh * kw
    taps_per_group = max(1, min(ktot, pack_target // max(c, 1)))
    acc = None
    for g in range(0, ktot, taps_per_group):
        chunk = taps[g:g + taps_per_group]
        lhs = chunk[0] if len(chunk) == 1 else jnp.concatenate(chunk, axis=-1)
        rhs = w_ref[g * c:(g + len(chunk)) * c, :]
        part = jnp.dot(lhs, rhs, preferred_element_type=jnp.float32)
        acc = part if acc is None else acc + part

    acc = acc + b_ref[...]                          # (M, Fp) + (1, Fp)
    o_ref[...] = acc.reshape(tho, wo_p, fp).astype(o_ref.dtype)


class IcoSpMaConvPallas:
    """Pallas equivalent of surfify.nn.IcoSpMaConv (circular pad + Conv2d)."""

    def __init__(self, in_feats, out_feats, kernel_size, stride=1, pad=0,
                 key=None, dtype=jnp.float32, compute_dtype=jnp.bfloat16):
        self.in_feats = in_feats
        self.out_feats = out_feats
        self.kernel_size = _pair(kernel_size)
        self.stride = _pair(stride)
        self.pad = pad
        self.compute_dtype = compute_dtype
        kh, kw = self.kernel_size
        fan_in = in_feats * kh * kw
        bound = 1.0 / math.sqrt(float(fan_in))
        if key is None:
            key = jax.random.PRNGKey(42)
        w_key, b_key = jax.random.split(key)
        # Deterministic init mimicking nn.Conv2d default (+-1/sqrt(fan_in)).
        self.weight = jax.random.uniform(
            w_key, (out_feats, in_feats, kh, kw), dtype=dtype,
            minval=-bound, maxval=bound)
        self.bias = jax.random.uniform(
            b_key, (out_feats,), dtype=dtype, minval=-bound, maxval=bound)

    def __call__(self, x):
        kh, kw = self.kernel_size
        sh, sw = self.stride
        xp = circular_pad(x, self.pad)
        n, c, hp, wp = xp.shape
        assert c == self.in_feats
        ho = (hp - kh) // sh + 1
        wo = (wp - kw) // sw + 1
        assert ho > 0 and wo > 0

        oi_max = (kh - 1) // sh        # halo rows per stride phase
        oj_max = (kw - 1) // sw        # halo cols per stride phase
        cdt = self.compute_dtype
        cbytes = jnp.dtype(cdt).itemsize
        obytes = jnp.dtype(x.dtype).itemsize
        phases = sh * sw
        ktot = kh * kw

        # Lane / sublane friendly output-tile geometry.
        sub = 8 * (4 // cbytes)                      # 8 (f32) / 16 (bf16)
        wo_p = _round_up(wo, sub)                    # free (M,C) collapse
        f = self.out_feats
        fp = _round_up(f, 128)                       # lane-dense output stores
        wq = wo_p + oj_max

        vmem_limit = _vmem_limit_bytes()
        tho = _pick_row_tile(ho, wo_p, wq, c, phases, oi_max, ktot, fp,
                             cbytes, obytes, int(vmem_limit * 0.8))
        ho_p = _round_up(ho, tho)
        n_t = ho_p // tho
        thq = tho + oi_max
        hq = ho_p + oi_max

        # --- wrapper relayout (single pass when jitted): crop / zero-pad to
        # the stride-phase footprint, split into (sh, sw) phases, gather the
        # output-row tiles (duplicating halo rows so kernel blocks are plain
        # Blocked, no overlap).
        hs, ws = hq * sh, wq * sw
        xp = xp[:, :, :min(hp, hs), :min(wp, ws)]
        xp = jnp.pad(xp, ((0, 0), (0, 0),
                          (0, hs - xp.shape[2]), (0, ws - xp.shape[3])))
        xph = xp.reshape(n, c, hq, sh, wq, sw)
        xph = xph.transpose(0, 3, 5, 2, 4, 1)        # (n, sh, sw, hq, wq, c)
        xph = xph.reshape(n, phases, hq, wq, c).astype(cdt)
        if n_t == 1:
            xtl = xph[:, None]                       # (n, 1, phases, thq, wq, c)
        else:
            row_idx = (jnp.arange(n_t) * tho)[:, None] + jnp.arange(thq)[None]
            xtl = jnp.take(xph, row_idx, axis=2)     # (n, phases, n_t, thq, ..)
            xtl = jnp.moveaxis(xtl, 2, 1)            # (n, n_t, phases, thq, ..)
        # TODO(synk): for NHWC producers/consumers, the NCHW->phase relayout
        # and the final NCHW transpose below could be dropped entirely.

        # Weights: (Cout, Cin, kh, kw) -> (kh*kw*Cin, Fp), tap-major then Cin.
        w2 = jnp.transpose(self.weight, (2, 3, 1, 0)).reshape(ktot * c, f)
        w2 = jnp.pad(w2, ((0, 0), (0, fp - f))).astype(cdt)
        b2 = jnp.pad(self.bias.astype(jnp.float32), (0, fp - f)).reshape(1, fp)

        cost = pl.CostEstimate(
            flops=2 * n * ho_p * wo_p * ktot * c * fp,
            transcendentals=0,
            bytes_accessed=int(xtl.size) * cbytes + int(w2.size) * cbytes
            + int(b2.size) * 4 + n * ho_p * wo_p * fp * obytes)

        def run(pack_target):
            kernel = functools.partial(
                _conv_tile_kernel, kh=kh, kw=kw, sh=sh, sw=sw,
                pack_target=pack_target)
            return pl.pallas_call(
                kernel,
                out_shape=jax.ShapeDtypeStruct((n, ho_p, wo_p, fp), x.dtype),
                grid=(n, n_t),
                in_specs=[
                    pl.BlockSpec((None, None, phases, thq, wq, c),
                                 lambda b, t: (b, t, 0, 0, 0, 0)),
                    # Weight / bias are grid-invariant; their (tiny) VMEM cost
                    # is negligible even double-buffered.
                    pl.BlockSpec((ktot * c, fp), lambda b, t: (0, 0)),
                    pl.BlockSpec((1, fp), lambda b, t: (0, 0)),
                ],
                out_specs=pl.BlockSpec((None, tho, wo_p, fp),
                                       lambda b, t: (b, t, 0, 0)),
                compiler_params=pltpu.CompilerParams(
                    dimension_semantics=("parallel", "parallel"),
                    vmem_limit_bytes=int(vmem_limit)),
                cost_estimate=cost,
            )(xtl, w2, b2)

        try:
            out = run(_K_PACK_TARGET)        # K-packed single matmul per tile
        except Exception:
            # Conservative fallback: per-tap K=C matmuls (always lowers).
            out = run(0)

        # Crop lane/row padding and return NCHW for parity with the PyTorch
        # module (slice + transpose fuse into one XLA pass under jit).
        return out[:, :ho, :wo, :f].transpose(0, 3, 1, 2)


if __name__ == "__main__":
    key = jax.random.PRNGKey(0)
    x_key, p_key = jax.random.split(key)

    # Small shapes consistent with the module: batch=2, in_feats=4, 16x16 map.
    N, Cin, H, W = 2, 4, 16, 16
    Cout, ksize, stride, pad = 8, 3, 2, 1
    x = jax.random.normal(x_key, (N, Cin, H, W), dtype=jnp.float32)

    module = IcoSpMaConvPallas(Cin, Cout, ksize, stride=stride, pad=pad,
                               key=p_key)
    y = jax.block_until_ready(module(x))

    # Reference: same circular pad + XLA conv on bf16-rounded operands so both
    # sides multiply identical values (f32 accumulation on both sides).
    xp = circular_pad(x, pad)
    xr = xp.astype(jnp.bfloat16).astype(jnp.float32)
    wr = module.weight.astype(jnp.bfloat16).astype(jnp.float32)
    ref = lax.conv_general_dilated(
        xr, wr, window_strides=(stride, stride), padding="VALID",
        dimension_numbers=("NCHW", "OIHW", "NCHW"))
    ref = ref + module.bias.reshape(1, -1, 1, 1)

    ho = (H + 2 * pad - ksize) // stride + 1
    wo = (W + 2 * pad - ksize) // stride + 1
    assert y.shape == (N, Cout, ho, wo), y.shape
    err = float(jnp.max(jnp.abs(y - ref)))
    assert err < 2e-3, err
    print("KERNEL_OK")
</pallas_src>

<mosaic_0001>
module attributes {stable_mosaic.version = 11 : i64} {
  func.func @_conv_tile_kernel(%arg0: i32, %arg1: i32, %arg2: memref<1x1x4x9x17x4xbf16, #tpu.memory_space<vmem>>, %arg3: memref<36x128xbf16, #tpu.memory_space<vmem>>, %arg4: memref<1x128xf32, #tpu.memory_space<vmem>>, %arg5: memref<1x8x16x128xf32, #tpu.memory_space<vmem>>) attributes {dimension_semantics = [#tpu.dimension_semantics<parallel>, #tpu.dimension_semantics<parallel>], iteration_bounds = array<i64: 2, 1>, scalar_prefetch = 0 : i64, scratch_operands = 0 : i64, tpu.core_type = #tpu.core_type<tc>, window_params = [{transform_indices = @transform_0, window_bounds = array<i64: 1, 1, 4, 9, 17, 4>}, {pipeline_mode = #tpu.pipeline_mode<synchronous>, transform_indices = @transform_1, window_bounds = array<i64: 36, 128>}, {pipeline_mode = #tpu.pipeline_mode<synchronous>, transform_indices = @transform_2, window_bounds = array<i64: 1, 128>}, {transform_indices = @transform_3, window_bounds = array<i64: 1, 8, 16, 128>}]} {
    %c0 = arith.constant 0 : index
    %c0_0 = arith.constant 0 : index
    %c0_1 = arith.constant 0 : index
    %c0_2 = arith.constant 0 : index
    %c0_3 = arith.constant 0 : index
    %c0_4 = arith.constant 0 : index
    %0 = vector.load %arg2[%c0, %c0_0, %c0_1, %c0_2, %c0_3, %c0_4] : memref<1x1x4x9x17x4xbf16, #tpu.memory_space<vmem>>, vector<1x1x1x8x16x4xbf16>
    %1 = vector.shape_cast %0 : vector<1x1x1x8x16x4xbf16> to vector<8x16x4xbf16>
    %2 = vector.shape_cast %1 : vector<8x16x4xbf16> to vector<128x4xbf16>
    %c0_5 = arith.constant 0 : index
    %c0_6 = arith.constant 0 : index
    %c1 = arith.constant 1 : index
    %c0_7 = arith.constant 0 : index
    %c0_8 = arith.constant 0 : index
    %c0_9 = arith.constant 0 : index
    %3 = vector.load %arg2[%c0_5, %c0_6, %c1, %c0_7, %c0_8, %c0_9] : memref<1x1x4x9x17x4xbf16, #tpu.memory_space<vmem>>, vector<1x1x1x8x16x4xbf16>
    %4 = vector.shape_cast %3 : vector<1x1x1x8x16x4xbf16> to vector<8x16x4xbf16>
    %5 = vector.shape_cast %4 : vector<8x16x4xbf16> to vector<128x4xbf16>
    %c0_10 = arith.constant 0 : index
    %c0_11 = arith.constant 0 : index
    %c0_12 = arith.constant 0 : index
    %c0_13 = arith.constant 0 : index
    %c1_14 = arith.constant 1 : index
    %c0_15 = arith.constant 0 : index
    %6 = vector.load %arg2[%c0_10, %c0_11, %c0_12, %c0_13, %c1_14, %c0_15] : memref<1x1x4x9x17x4xbf16, #tpu.memory_space<vmem>>, vector<1x1x1x8x16x4xbf16>
    %7 = vector.shape_cast %6 : vector<1x1x1x8x16x4xbf16> to vector<8x16x4xbf16>
    %8 = vector.shape_cast %7 : vector<8x16x4xbf16> to vector<128x4xbf16>
    %c0_16 = arith.constant 0 : index
    %c0_17 = arith.constant 0 : index
    %c2 = arith.constant 2 : index
    %c0_18 = arith.constant 0 : index
    %c0_19 = arith.constant 0 : index
    %c0_20 = arith.constant 0 : index
    %9 = vector.load %arg2[%c0_16, %c0_17, %c2, %c0_18, %c0_19, %c0_20] : memref<1x1x4x9x17x4xbf16, #tpu.memory_space<vmem>>, vector<1x1x1x8x16x4xbf16>
    %10 = vector.shape_cast %9 : vector<1x1x1x8x16x4xbf16> to vector<8x16x4xbf16>
    %11 = vector.shape_cast %10 : vector<8x16x4xbf16> to vector<128x4xbf16>
    %c0_21 = arith.constant 0 : index
    %c0_22 = arith.constant 0 : index
    %c3 = arith.constant 3 : index
    %c0_23 = arith.constant 0 : index
    %c0_24 = arith.constant 0 : index
    %c0_25 = arith.constant 0 : index
    %12 = vector.load %arg2[%c0_21, %c0_22, %c3, %c0_23, %c0_24, %c0_25] : memref<1x1x4x9x17x4xbf16, #tpu.memory_space<vmem>>, vector<1x1x1x8x16x4xbf16>
    %13 = vector.shape_cast %12 : vector<1x1x1x8x16x4xbf16> to vector<8x16x4xbf16>
    %14 = vector.shape_cast %13 : vector<8x16x4xbf16> to vector<128x4xbf16>
    %c0_26 = arith.constant 0 : index
    %c0_27 = arith.constant 0 : index
    %c2_28 = arith.constant 2 : index
    %c0_29 = arith.constant 0 : index
    %c1_30 = arith.constant 1 : index
    %c0_31 = arith.constant 0 : index
    %15 = vector.load %arg2[%c0_26, %c0_27, %c2_28, %c0_29, %c1_30, %c0_31] : memref<1x1x4x9x17x4xbf16, #tpu.memory_space<vmem>>, vector<1x1x1x8x16x4xbf16>
    %16 = vector.shape_cast %15 : vector<1x1x1x8x16x4xbf16> to vector<8x16x4xbf16>
    %17 = vector.shape_cast %16 : vector<8x16x4xbf16> to vector<128x4xbf16>
    %c0_32 = arith.constant 0 : index
    %c0_33 = arith.constant 0 : index
    %c0_34 = arith.constant 0 : index
    %c1_35 = arith.constant 1 : index
    %c0_36 = arith.constant 0 : index
    %c0_37 = arith.constant 0 : index
    %18 = vector.load %arg2[%c0_32, %c0_33, %c0_34, %c1_35, %c0_36, %c0_37] : memref<1x1x4x9x17x4xbf16, #tpu.memory_space<vmem>>, vector<1x1x1x8x16x4xbf16>
    %19 = vector.shape_cast %18 : vector<1x1x1x8x16x4xbf16> to vector<8x16x4xbf16>
    %20 = vector.shape_cast %19 : vector<8x16x4xbf16> to vector<128x4xbf16>
    %c0_38 = arith.constant 0 : index
    %c0_39 = arith.constant 0 : index
    %c1_40 = arith.constant 1 : index
    %c1_41 = arith.constant 1 : index
    %c0_42 = arith.constant 0 : index
    %c0_43 = arith.constant 0 : index
    %21 = vector.load %arg2[%c0_38, %c0_39, %c1_40, %c1_41, %c0_42, %c0_43] : memref<1x1x4x9x17x4xbf16, #tpu.memory_space<vmem>>, vector<1x1x1x8x16x4xbf16>
    %22 = vector.shape_cast %21 : vector<1x1x1x8x16x4xbf16> to vector<8x16x4xbf16>
    %23 = vector.shape_cast %22 : vector<8x16x4xbf16> to vector<128x4xbf16>
    %c0_44 = arith.constant 0 : index
    %c0_45 = arith.constant 0 : index
    %c0_46 = arith.constant 0 : index
    %c1_47 = arith.constant 1 : index
    %c1_48 = arith.constant 1 : index
    %c0_49 = arith.constant 0 : index
    %24 = vector.load %arg2[%c0_44, %c0_45, %c0_46, %c1_47, %c1_48, %c0_49] : memref<1x1x4x9x17x4xbf16, #tpu.memory_space<vmem>>, vector<1x1x1x8x16x4xbf16>
    %25 = vector.shape_cast %24 : vector<1x1x1x8x16x4xbf16> to vector<8x16x4xbf16>
    %26 = vector.shape_cast %25 : vector<8x16x4xbf16> to vector<128x4xbf16>
    %27 = tpu.concatenate %2, %5, %8, %11, %14, %17, %20, %23, %26 in 1 : vector<128x4xbf16>, vector<128x4xbf16>, vector<128x4xbf16>, vector<128x4xbf16>, vector<128x4xbf16>, vector<128x4xbf16>, vector<128x4xbf16>, vector<128x4xbf16>, vector<128x4xbf16> -> vector<128x36xbf16>
    %c0_50 = arith.constant 0 : index
    %c0_51 = arith.constant 0 : index
    %28 = vector.load %arg3[%c0_50, %c0_51] : memref<36x128xbf16, #tpu.memory_space<vmem>>, vector<36x128xbf16>
    %cst = arith.constant dense<0.000000e+00> : vector<128x128xf32>
    %29 = tpu.matmul %27, %28, %cst {dimension_numbers = #tpu.dot_dimension_numbers<[1], [0], [0], [1], [0, 0, 1, 1], [], []>} : vector<128x36xbf16>, vector<36x128xbf16>, vector<128x128xf32> -> vector<128x128xf32>
    %c0_52 = arith.constant 0 : index
    %c0_53 = arith.constant 0 : index
    %30 = vector.load %arg4[%c0_52, %c0_53] : memref<1x128xf32, #tpu.memory_space<vmem>>, vector<1x128xf32>
    %31 = vector.broadcast %30 : vector<1x128xf32> to vector<128x128xf32>
    %32 = arith.addf %29, %31 : vector<128x128xf32>
    %33 = vector.shape_cast %32 : vector<128x128xf32> to vector<8x16x128xf32>
    %c0_54 = arith.constant 0 : index
    %c0_55 = arith.constant 0 : index
    %c0_56 = arith.constant 0 : index
    %c0_57 = arith.constant 0 : index
    %34 = vector.load %arg5[%c0_54, %c0_55, %c0_56, %c0_57] : memref<1x8x16x128xf32, #tpu.memory_space<vmem>>, vector<1x8x16x128xf32>
    %35 = vector.shape_cast %34 : vector<1x8x16x128xf32> to vector<8x16x128xf32>
    %36 = vector.shape_cast %33 : vector<8x16x128xf32> to vector<1x8x16x128xf32>
    tpu.vector_store %arg5[%c0_54, %c0_55, %c0_56, %c0_57], %36 {strides = array<i32>} : memref<1x8x16x128xf32, #tpu.memory_space<vmem>>, vector<1x8x16x128xf32>,
    return
  }
  func.func @transform_0(%arg0: i32, %arg1: i32) -> (i32, i32, i32, i32, i32, i32) {
    %c0_i32 = arith.constant 0 : i32
    %c0_i32_0 = arith.constant 0 : i32
    %c0_i32_1 = arith.constant 0 : i32
    %c0_i32_2 = arith.constant 0 : i32
    %c0_i32_3 = arith.constant 0 : i32
    return %arg0, %arg1, %c0_i32, %c0_i32_0, %c0_i32_1, %c0_i32_2 : i32, i32, i32, i32, i32, i32
  }
  func.func @transform_1(%arg0: i32, %arg1: i32) -> (i32, i32) {
    %c0_i32 = arith.constant 0 : i32
    %c0_i32_0 = arith.constant 0 : i32
    %c0_i32_1 = arith.constant 0 : i32
    return %c0_i32, %c0_i32_0 : i32, i32
  }
  func.func @transform_2(%arg0: i32, %arg1: i32) -> (i32, i32) {
    %c0_i32 = arith.constant 0 : i32
    %c0_i32_0 = arith.constant 0 : i32
    %c0_i32_1 = arith.constant 0 : i32
    return %c0_i32, %c0_i32_0 : i32, i32
  }
  func.func @transform_3(%arg0: i32, %arg1: i32) -> (i32, i32, i32, i32) {
    %c0_i32 = arith.constant 0 : i32
    %c0_i32_0 = arith.constant 0 : i32
    %c0_i32_1 = arith.constant 0 : i32
    return %arg0, %arg1, %c0_i32, %c0_i32_0 : i32, i32, i32, i32
  }
}

module attributes {stable_mosaic.version = 11 : i64} {
  func.func @_conv_tile_kernel(%arg0: i32, %arg1: i32, %arg2: memref<1x1x4x9x17x4xbf16, #tpu.memory_space<vmem>>, %arg3: memref<36x128xbf16, #tpu.memory_space<vmem>>, %arg4: memref<1x128xf32, #tpu.memory_space<vmem>>, %arg5: memref<1x8x16x128xf32, #tpu.memory_space<vmem>>) attributes {dimension_semantics = [#tpu.dimension_semantics<parallel>, #tpu.dimension_semantics<parallel>], iteration_bounds = array<i64: 2, 1>, scalar_prefetch = 0 : i64, scratch_operands = 0 : i64, tpu.core_type = #tpu.core_type<tc>, window_params = [{transform_indices = @transform_0, window_bounds = array<i64: 1, 1, 4, 9, 17, 4>}, {pipeline_mode = #tpu.pipeline_mode<synchronous>, transform_indices = @transform_1, window_bounds = array<i64: 36, 128>}, {pipeline_mode = #tpu.pipeline_mode<synchronous>, transform_indices = @transform_2, window_bounds = array<i64: 1, 128>}, {transform_indices = @transform_3, window_bounds = array<i64: 1, 8, 16, 128>}]} {
    %c0 = arith.constant 0 : index
    %c0_0 = arith.constant 0 : index
    %c0_1 = arith.constant 0 : index
    %c0_2 = arith.constant 0 : index
    %c0_3 = arith.constant 0 : index
    %c0_4 = arith.constant 0 : index
    %0 = vector.load %arg2[%c0, %c0_0, %c0_1, %c0_2, %c0_3, %c0_4] : memref<1x1x4x9x17x4xbf16, #tpu.memory_space<vmem>>, vector<1x1x1x8x16x4xbf16>
    %1 = vector.shape_cast %0 : vector<1x1x1x8x16x4xbf16> to vector<8x16x4xbf16>
    %2 = vector.shape_cast %1 : vector<8x16x4xbf16> to vector<128x4xbf16>
    %c0_5 = arith.constant 0 : index
    %c0_6 = arith.constant 0 : index
    %c1 = arith.constant 1 : index
    %c0_7 = arith.constant 0 : index
    %c0_8 = arith.constant 0 : index
    %c0_9 = arith.constant 0 : index
    %3 = vector.load %arg2[%c0_5, %c0_6, %c1, %c0_7, %c0_8, %c0_9] : memref<1x1x4x9x17x4xbf16, #tpu.memory_space<vmem>>, vector<1x1x1x8x16x4xbf16>
    %4 = vector.shape_cast %3 : vector<1x1x1x8x16x4xbf16> to vector<8x16x4xbf16>
    %5 = vector.shape_cast %4 : vector<8x16x4xbf16> to vector<128x4xbf16>
    %c0_10 = arith.constant 0 : index
    %c0_11 = arith.constant 0 : index
    %c0_12 = arith.constant 0 : index
    %c0_13 = arith.constant 0 : index
    %c1_14 = arith.constant 1 : index
    %c0_15 = arith.constant 0 : index
    %6 = vector.load %arg2[%c0_10, %c0_11, %c0_12, %c0_13, %c1_14, %c0_15] : memref<1x1x4x9x17x4xbf16, #tpu.memory_space<vmem>>, vector<1x1x1x8x16x4xbf16>
    %7 = vector.shape_cast %6 : vector<1x1x1x8x16x4xbf16> to vector<8x16x4xbf16>
    %8 = vector.shape_cast %7 : vector<8x16x4xbf16> to vector<128x4xbf16>
    %c0_16 = arith.constant 0 : index
    %c0_17 = arith.constant 0 : index
    %c2 = arith.constant 2 : index
    %c0_18 = arith.constant 0 : index
    %c0_19 = arith.constant 0 : index
    %c0_20 = arith.constant 0 : index
    %9 = vector.load %arg2[%c0_16, %c0_17, %c2, %c0_18, %c0_19, %c0_20] : memref<1x1x4x9x17x4xbf16, #tpu.memory_space<vmem>>, vector<1x1x1x8x16x4xbf16>
    %10 = vector.shape_cast %9 : vector<1x1x1x8x16x4xbf16> to vector<8x16x4xbf16>
    %11 = vector.shape_cast %10 : vector<8x16x4xbf16> to vector<128x4xbf16>
    %c0_21 = arith.constant 0 : index
    %c0_22 = arith.constant 0 : index
    %c3 = arith.constant 3 : index
    %c0_23 = arith.constant 0 : index
    %c0_24 = arith.constant 0 : index
    %c0_25 = arith.constant 0 : index
    %12 = vector.load %arg2[%c0_21, %c0_22, %c3, %c0_23, %c0_24, %c0_25] : memref<1x1x4x9x17x4xbf16, #tpu.memory_space<vmem>>, vector<1x1x1x8x16x4xbf16>
    %13 = vector.shape_cast %12 : vector<1x1x1x8x16x4xbf16> to vector<8x16x4xbf16>
    %14 = vector.shape_cast %13 : vector<8x16x4xbf16> to vector<128x4xbf16>
    %c0_26 = arith.constant 0 : index
    %c0_27 = arith.constant 0 : index
    %c2_28 = arith.constant 2 : index
    %c0_29 = arith.constant 0 : index
    %c1_30 = arith.constant 1 : index
    %c0_31 = arith.constant 0 : index
    %15 = vector.load %arg2[%c0_26, %c0_27, %c2_28, %c0_29, %c1_30, %c0_31] : memref<1x1x4x9x17x4xbf16, #tpu.memory_space<vmem>>, vector<1x1x1x8x16x4xbf16>
    %16 = vector.shape_cast %15 : vector<1x1x1x8x16x4xbf16> to vector<8x16x4xbf16>
    %17 = vector.shape_cast %16 : vector<8x16x4xbf16> to vector<128x4xbf16>
    %c0_32 = arith.constant 0 : index
    %c0_33 = arith.constant 0 : index
    %c0_34 = arith.constant 0 : index
    %c1_35 = arith.constant 1 : index
    %c0_36 = arith.constant 0 : index
    %c0_37 = arith.constant 0 : index
    %18 = vector.load %arg2[%c0_32, %c0_33, %c0_34, %c1_35, %c0_36, %c0_37] : memref<1x1x4x9x17x4xbf16, #tpu.memory_space<vmem>>, vector<1x1x1x8x16x4xbf16>
    %19 = vector.shape_cast %18 : vector<1x1x1x8x16x4xbf16> to vector<8x16x4xbf16>
    %20 = vector.shape_cast %19 : vector<8x16x4xbf16> to vector<128x4xbf16>
    %c0_38 = arith.constant 0 : index
    %c0_39 = arith.constant 0 : index
    %c1_40 = arith.constant 1 : index
    %c1_41 = arith.constant 1 : index
    %c0_42 = arith.constant 0 : index
    %c0_43 = arith.constant 0 : index
    %21 = vector.load %arg2[%c0_38, %c0_39, %c1_40, %c1_41, %c0_42, %c0_43] : memref<1x1x4x9x17x4xbf16, #tpu.memory_space<vmem>>, vector<1x1x1x8x16x4xbf16>
    %22 = vector.shape_cast %21 : vector<1x1x1x8x16x4xbf16> to vector<8x16x4xbf16>
    %23 = vector.shape_cast %22 : vector<8x16x4xbf16> to vector<128x4xbf16>
    %c0_44 = arith.constant 0 : index
    %c0_45 = arith.constant 0 : index
    %c0_46 = arith.constant 0 : index
    %c1_47 = arith.constant 1 : index
    %c1_48 = arith.constant 1 : index
    %c0_49 = arith.constant 0 : index
    %24 = vector.load %arg2[%c0_44, %c0_45, %c0_46, %c1_47, %c1_48, %c0_49] : memref<1x1x4x9x17x4xbf16, #tpu.memory_space<vmem>>, vector<1x1x1x8x16x4xbf16>
    %25 = vector.shape_cast %24 : vector<1x1x1x8x16x4xbf16> to vector<8x16x4xbf16>
    %26 = vector.shape_cast %25 : vector<8x16x4xbf16> to vector<128x4xbf16>
    %c0_50 = arith.constant 0 : index
    %c0_51 = arith.constant 0 : index
    %27 = vector.load %arg3[%c0_50, %c0_51] : memref<36x128xbf16, #tpu.memory_space<vmem>>, vector<4x128xbf16>
    %cst = arith.constant dense<0.000000e+00> : vector<128x128xf32>
    %28 = tpu.matmul %2, %27, %cst {dimension_numbers = #tpu.dot_dimension_numbers<[1], [0], [0], [1], [0, 0, 1, 1], [], []>} : vector<128x4xbf16>, vector<4x128xbf16>, vector<128x128xf32> -> vector<128x128xf32>
    %c4 = arith.constant 4 : index
    %c0_52 = arith.constant 0 : index
    %29 = vector.load %arg3[%c4, %c0_52] : memref<36x128xbf16, #tpu.memory_space<vmem>>, vector<4x128xbf16>
    %cst_53 = arith.constant dense<0.000000e+00> : vector<128x128xf32>
    %30 = tpu.matmul %5, %29, %cst_53 {dimension_numbers = #tpu.dot_dimension_numbers<[1], [0], [0], [1], [0, 0, 1, 1], [], []>} : vector<128x4xbf16>, vector<4x128xbf16>, vector<128x128xf32> -> vector<128x128xf32>
    %31 = arith.addf %28, %30 : vector<128x128xf32>
    %c8 = arith.constant 8 : index
    %c0_54 = arith.constant 0 : index
    %32 = vector.load %arg3[%c8, %c0_54] : memref<36x128xbf16, #tpu.memory_space<vmem>>, vector<4x128xbf16>
    %cst_55 = arith.constant dense<0.000000e+00> : vector<128x128xf32>
    %33 = tpu.matmul %8, %32, %cst_55 {dimension_numbers = #tpu.dot_dimension_numbers<[1], [0], [0], [1], [0, 0, 1, 1], [], []>} : vector<128x4xbf16>, vector<4x128xbf16>, vector<128x128xf32> -> vector<128x128xf32>
    %34 = arith.addf %31, %33 : vector<128x128xf32>
    %c12 = arith.constant 12 : index
    %c0_56 = arith.constant 0 : index
    %35 = vector.load %arg3[%c12, %c0_56] : memref<36x128xbf16, #tpu.memory_space<vmem>>, vector<4x128xbf16>
    %cst_57 = arith.constant dense<0.000000e+00> : vector<128x128xf32>
    %36 = tpu.matmul %11, %35, %cst_57 {dimension_numbers = #tpu.dot_dimension_numbers<[1], [0], [0], [1], [0, 0, 1, 1], [], []>} : vector<128x4xbf16>, vector<4x128xbf16>, vector<128x128xf32> -> vector<128x128xf32>
    %37 = arith.addf %34, %36 : vector<128x128xf32>
    %c16 = arith.constant 16 : index
    %c0_58 = arith.constant 0 : index
    %38 = vector.load %arg3[%c16, %c0_58] : memref<36x128xbf16, #tpu.memory_space<vmem>>, vector<4x128xbf16>
    %cst_59 = arith.constant dense<0.000000e+00> : vector<128x128xf32>
    %39 = tpu.matmul %14, %38, %cst_59 {dimension_numbers = #tpu.dot_dimension_numbers<[1], [0], [0], [1], [0, 0, 1, 1], [], []>} : vector<128x4xbf16>, vector<4x128xbf16>, vector<128x128xf32> -> vector<128x128xf32>
    %40 = arith.addf %37, %39 : vector<128x128xf32>
    %c20 = arith.constant 20 : index
    %c0_60 = arith.constant 0 : index
    %41 = vector.load %arg3[%c20, %c0_60] : memref<36x128xbf16, #tpu.memory_space<vmem>>, vector<4x128xbf16>
    %cst_61 = arith.constant dense<0.000000e+00> : vector<128x128xf32>
    %42 = tpu.matmul %17, %41, %cst_61 {dimension_numbers = #tpu.dot_dimension_numbers<[1], [0], [0], [1], [0, 0, 1, 1], [], []>} : vector<128x4xbf16>, vector<4x128xbf16>, vector<128x128xf32> -> vector<128x128xf32>
    %43 = arith.addf %40, %42 : vector<128x128xf32>
    %c24 = arith.constant 24 : index
    %c0_62 = arith.constant 0 : index
    %44 = vector.load %arg3[%c24, %c0_62] : memref<36x128xbf16, #tpu.memory_space<vmem>>, vector<4x128xbf16>
    %cst_63 = arith.constant dense<0.000000e+00> : vector<128x128xf32>
    %45 = tpu.matmul %20, %44, %cst_63 {dimension_numbers = #tpu.dot_dimension_numbers<[1], [0], [0], [1], [0, 0, 1, 1], [], []>} : vector<128x4xbf16>, vector<4x128xbf16>, vector<128x128xf32> -> vector<128x128xf32>
    %46 = arith.addf %43, %45 : vector<128x128xf32>
    %c28 = arith.constant 28 : index
    %c0_64 = arith.constant 0 : index
    %47 = vector.load %arg3[%c28, %c0_64] : memref<36x128xbf16, #tpu.memory_space<vmem>>, vector<4x128xbf16>
    %cst_65 = arith.constant dense<0.000000e+00> : vector<128x128xf32>
    %48 = tpu.matmul %23, %47, %cst_65 {dimension_numbers = #tpu.dot_dimension_numbers<[1], [0], [0], [1], [0, 0, 1, 1], [], []>} : vector<128x4xbf16>, vector<4x128xbf16>, vector<128x128xf32> -> vector<128x128xf32>
    %49 = arith.addf %46, %48 : vector<128x128xf32>
    %c32 = arith.constant 32 : index
    %c0_66 = arith.constant 0 : index
    %50 = vector.load %arg3[%c32, %c0_66] : memref<36x128xbf16, #tpu.memory_space<vmem>>, vector<4x128xbf16>
    %cst_67 = arith.constant dense<0.000000e+00> : vector<128x128xf32>
    %51 = tpu.matmul %26, %50, %cst_67 {dimension_numbers = #tpu.dot_dimension_numbers<[1], [0], [0], [1], [0, 0, 1, 1], [], []>} : vector<128x4xbf16>, vector<4x128xbf16>, vector<128x128xf32> -> vector<128x128xf32>
    %52 = arith.addf %49, %51 : vector<128x128xf32>
    %c0_68 = arith.constant 0 : index
    %c0_69 = arith.constant 0 : index
    %53 = vector.load %arg4[%c0_68, %c0_69] : memref<1x128xf32, #tpu.memory_space<vmem>>, vector<1x128xf32>
    %54 = vector.broadcast %53 : vector<1x128xf32> to vector<128x128xf32>
    %55 = arith.addf %52, %54 : vector<128x128xf32>
    %56 = vector.shape_cast %55 : vector<128x128xf32> to vector<8x16x128xf32>
    %c0_70 = arith.constant 0 : index
    %c0_71 = arith.constant 0 : index
    %c0_72 = arith.constant 0 : index
    %c0_73 = arith.constant 0 : index
    %57 = vector.load %arg5[%c0_70, %c0_71, %c0_72, %c0_73] : memref<1x8x16x128xf32, #tpu.memory_space<vmem>>, vector<1x8x16x128xf32>
    %58 = vector.shape_cast %57 : vector<1x8x16x128xf32> to vector<8x16x128xf32>
    %59 = vector.shape_cast %56 : vector<8x16x128xf32> to vector<1x8x16x128xf32>
    tpu.vector_store %arg5[%c0_70, %c0_71, %c0_72, %c0_73], %59 {strides = array<i32>} : memref<1x8x16x128xf32, #tpu.memory_space<vmem>>, vector<1x8x16x128xf32>,
    return
  }
  func.func @transform_0(%arg0: i32, %arg1: i32) -> (i32, i32, i32, i32, i32, i32) {
    %c0_i32 = arith.constant 0 : i32
    %c0_i32_0 = arith.constant 0 : i32
    %c0_i32_1 = arith.constant 0 : i32
    %c0_i32_2 = arith.constant 0 : i32
    %c0_i32_3 = arith.constant 0 : i32
    return %arg0, %arg1, %c0_i32, %c0_i32_0, %c0_i32_1, %c0_i32_2 : i32, i32, i32, i32, i32, i32
  }
  func.func @transform_1(%arg0: i32, %arg1: i32) -> (i32, i32) {
    %c0_i32 = arith.constant 0 : i32
    %c0_i32_0 = arith.constant 0 : i32
    %c0_i32_1 = arith.constant 0 : i32
    return %c0_i32, %c0_i32_0 : i32, i32
  }
  func.func @transform_2(%arg0: i32, %arg1: i32) -> (i32, i32) {
    %c0_i32 = arith.constant 0 : i32
    %c0_i32_0 = arith.constant 0 : i32
    %c0_i32_1 = arith.constant 0 : i32
    return %c0_i32, %c0_i32_0 : i32, i32
  }
  func.func @transform_3(%arg0: i32, %arg1: i32) -> (i32, i32, i32, i32) {
    %c0_i32 = arith.constant 0 : i32
    %c0_i32_0 = arith.constant 0 : i32
    %c0_i32_1 = arith.constant 0 : i32
    return %arg0, %arg1, %c0_i32, %c0_i32_0 : i32, i32, i32, i32
  }
}

</mosaic_0001>

<bundles_post_ra>
// kernel: tpu_custom_call.1
= control target key start
LH: loop header
LB: loop body
LE: loop exit
PB: predicated region body
PF: predicated region fallthrough
CT: control target
= control target key end

     0   :  { %8 = vsyncpa [#allocation3], 0  ;;  %s2926_s0 = inlined_call_operand.vmem [shape: bf16[2,1,4,9,17,4], index: 0, kind: input, shape index: {}]   ;;  %s2927_s1 = inlined_call_operand.vmem [shape: bf16[36,128], index: 1, kind: input, shape index: {}]   ;;  %s2928_s2 = inlined_call_operand.vmem [shape: f32[1,128], index: 2, kind: input, shape index: {}]   ;;  %s2929_s3 = inlined_call_operand.hbm [shape: f32[2,8,16,128], index: 3, kind: output, shape index: {}]  }
   0x1   :  { %10 = vsyncpa [#allocation3 + $0x1], 0  ;;  %s2215_s12 = smov 0   ;;  %s2217_s13 = smov 0  }
   0x2   :  { %s2219_s14 = smov 0   ;;  %s2221_s15 = smov 0  }
   0x3   :  { %s2223_s16 = smov 0   ;;  %s2225_s17 = smov 0  }
   0x4 LB: > { %s1747_s18 = sadd.s32 4294967295, %s2183_s17   ;;  %s1748_s19 = sadd.s32 4294967294, %s2183_s17   ;;  %s2183_s17 = sphi %s2225_s17, %s16_s17   ;;  %s2179_s16 = sphi %s2223_s16, %s2938_s16   ;;  %s2175_s15 = sphi %s2221_s15, %s2937_s15   ;;  %s2171_s14 = sphi %s2219_s14, %s2936_s14   ;;  %s2167_s13 = sphi %s2217_s13, %s2935_s13   ;;  %s2163_s12 = sphi %s2215_s12, %s2934_s12  }
   0x5   : > { %s28_s20 = sadd.s32 1, %s2179_s16  ;;  %s107_s21 = sadd.s32 1, %s2171_s14 }
   0x6   : > { %p30_p0 = scmp.ge.s32.totalorder %s28_s20, 2  ;;  %p117_p1 = scmp.ne.s32.totalorder %s2171_s14, %s2167_s13 }
   0x7   : > { %p118_p2 = scmp.eq.s32.totalorder %s1747_s18, 1  ;;  %p123_p3 = scmp.ne.s32.totalorder %s2167_s13, %s2163_s12 }
   0x8   : > { %s2940_s20 = smov (%p30_p0, %s28_s20), 0  ;;  %p124_p5 = scmp.eq.s32.totalorder %s1748_s19, 1 }
   0x9   : > { %p2255_p4 = por %p118_p2, %p117_p1  ;;  %s102_s23 = ssub.s32 %s2179_s16, %s2940_s20 }
   0xa   : > { %p1751_p6 = scmp.ge.s32.totalorder %s2183_s17, 1  ;;  %p105_p7 = scmp.eq.s32.totalorder %s102_s23, 0 }
   0xb   : > { %p2262_p8 = por %p124_p5, %p123_p3  ;;  %p160_p9 = scmp.lt.s32.totalorder %s2183_s17, 3 }
   0xc   : > { %s2268_s25 = scalar_select %p105_p7, %s2171_s14, %s107_s21  }
   0xd   : > { %p161_p10 = pnand %p1751_p6, %p160_p9 }
   0xe   : > { %p188_p11 = scmp.lt.s32.totalorder (!%p161_p10), %s2175_s15, 1  ;;  %s2185_s4 = smov (!%p161_p10), 4   ;;  %vm240_vm0 = vsmask.f32 (!%p161_p10), 3328  ;;  %vm241_vm1 = vsmask.f32 (!%p161_p10), 7440 }
   0xf   : > { %164 = sbr.rel (%p161_p10) target bundleno = 512 (0x200), region = 32  ;;  %s2186_s5 = smov (!%p161_p10), 12   ;;  %vm2318_vm2 = vmor (!%p161_p10), %vm240_vm0, %vm241_vm1  ;;  %vm1531_vm3 = vcmask (!%p161_p10), 1041408   ;;  %vm1368_vm4 = vcmask (!%p161_p10), 64512   ;;  %vm1343_vm5 = vcmask (!%p161_p10), 31744   ;;  %vm1385_vm6 = vcmask (!%p161_p10), 97280  }
  0x10   : > { %s2187_s6 = smov (!%p161_p10), 8   ;;  %s2188_s7 = smov (!%p161_p10), 16   ;;  %vm1402_vm7 = vcmask (!%p161_p10), 130048   ;;  %vm1419_vm8 = vcmask (!%p161_p10), 162816   ;;  %vm1436_vm9 = vcmask (!%p161_p10), 195584   ;;  %vm1453_vm10 = vcmask (!%p161_p10), 228352  }
  0x11   : > { %s2189_s8 = smov (!%p161_p10), 20   ;;  %s2190_s9 = smov (!%p161_p10), 24   ;;  %vm1470_vm11 = vcmask (!%p161_p10), 261120   ;;  %vm1514_vm12 = vcmask (!%p161_p10), 293888  }
  0x12   : > { %s2191_s21 = smov (!%p161_p10), 28   ;;  %s2192_s23 = smov (!%p161_p10), 32  }
  0x13   : > { %s185_s28 = sand.u32 (!%p161_p10), 1, %s2167_s13   ;;  %s2193_s19 = smov (!%p161_p10), [#allocation2]  }
  0x14   : > { %s1752_s29 = sshll.u32 (!%p161_p10), %s185_s28, 7 }
  0x16   : > { %s189_s26 = scalar_select %p188_p11, %s2175_s15, 1 }
  0x18   : > { %s1981_s27 = smul.u32 432, %s189_s26 }
  0x1a   : > { %s2275_s30 = scalar_lea.vmem %s2926_s0, %s1981_s27 }
  0x1b   : > { %v2046_v0 = vld [vmem:[%s2275_s30 + $0x78] sm:$0xff]   ;;  %v2047_v1 = vld [vmem:[%s2275_s30 + $0x6c] sm:$0xff]   ;;  %v1778_v4 = vld [vmem:[%s2275_s30 + $0x108] sm:$0xf] }
  0x1c   : > { %985 = vrot.lane.b32.xlu1 %v2046_v0, %s2185_s4  ;;  %v2048_v2 = vld [vmem:[%s2275_s30 + $0xa8] sm:$0xff]   ;;  %983 = vrot.lane.b32.xlu0 %v2047_v1, %s2185_s4  ;;  %v2049_v3 = vld [vmem:[%s2275_s30 + $0x9c] sm:$0xff]   ;;  %v574_v6 = vshrl.u32 %v1778_v4, 16  ;;  %v577_v7 = vshll.u32 %v1778_v4, 16 }
  0x1d   : > { %v1779_v5 = vld [vmem:[%s2275_s30 + $0x10c] sm:$0xf]  ;;  %v1770_v10 = vld [vmem:[%s2275_s30 + $0xd8] sm:$0xf]  ;;  %v2288_v12 = vld [vmem:[%s2275_s30 + $0xdc] sm:$0xf] }
  0x1e   : > { %v583_v8 = vshll.u32 %v1779_v5, 16  ;;  %v587_v9 = vshrl.u32 %v1779_v5, 16  ;;  %v1878_v11 = vcombine.low %v1778_v4, %v1779_v5  ;;  %v478_v13 = vshrl.u32 %v1770_v10, 16  ;;  %v207_v15 = vld [vmem:[%s2275_s30 + $0x30] sm:$0xf] }
  0x1f   : > { %v481_v14 = vshll.u32 %v1770_v10, 16  ;;  %v2292_v16 = vrot.slane %v574_v6, 4  ;;  %v2294_v17 = vrot.slane %v577_v7, 5  ;;  %v487_v18 = vshll.u32 %v2288_v12, 16  ;;  %v208_v19 = vld [vmem:[%s2275_s30 + $0x34] sm:$0xf] }
  0x20   : > { %993 = vrot.lane.b32.xlu1 %v2048_v2, %s2185_s4  ;;  %991 = vrot.lane.b32.xlu0 %v2049_v3, %s2185_s4  ;;  %v2298_v20 = vrot.slane %v583_v8, 5  ;;  %v2300_v21 = vrot.slane %v587_v9, 4  ;;  %v2302_v22 = vrot.slane %v478_v13, 4  ;;  %v236_v24 = vld [vmem:[%s2275_s30 + $0x38] sm:$0x1]  ;;  %v1874_v25 = vcombine.low %v1770_v10, %v2288_v12 }
  0x21   : > { %v2304_v23 = vrot.slane %v481_v14, 5  ;;  %v340_v26 = vshrl.u32 %v207_v15, 16  ;;  %v343_v27 = vshll.u32 %v207_v15, 16  ;;  %v349_v28 = vshll.u32 %v208_v19, 16  ;;  %v199_v29 = vld [vmem:[%s2275_s30] sm:$0xf] }
  0x22   : > { %v491_v30 = vshrl.u32 %v2288_v12, 16  ;;  %v353_v31 = vshrl.u32 %v208_v19, 16  ;;  %v359_v32 = vshll.u32 %v236_v24, 16  ;;  %v200_v33 = vld [vmem:[%s2275_s30 + $0x4] sm:$0xf]  ;;  %v244_v34 = vshrl.u32 %v199_v29, 16 }
  0x23   : > { %v342_v35 = vrot.slane %v340_v26, 4  ;;  %v345_v36 = vrot.slane %v343_v27, 5  ;;  %v351_v37 = vrot.slane %v349_v28, 5  ;;  %v232_v38 = vld [vmem:[%s2275_s30 + $0x8] sm:$0x1]  ;;  %v247_v39 = vshll.u32 %v199_v29, 16 }
  0x24   : > { %1087 = vrot.lane.b32.xlu1 %v1878_v11, %s2186_s5  ;;  %1079 = vrot.lane.b32.xlu0 %v1874_v25, %s2186_s5  ;;  %v355_v40 = vrot.slane %v353_v31, 4  ;;  %v361_v41 = vrot.slane %v359_v32, 5  ;;  %v246_v42 = vrot.slane %v244_v34, 4  ;;  %v253_v43 = vshll.u32 %v200_v33, 16  ;;  %v209_v44 = vld [vmem:[%s2275_s30 + $0x3c] sm:$0xf] }
  0x25   : > { %v346_v45 = vor.u32 %v345_v36, %v342_v35  ;;  %v249_v46 = vrot.slane %v247_v39, 5  ;;  %v257_v47 = vshrl.u32 %v200_v33, 16  ;;  %v263_v48 = vshll.u32 %v232_v38, 16  ;;  %v210_v49 = vld [vmem:[%s2275_s30 + $0x40] sm:$0xf] }
  0x26   : > { %v356_v51 = vor.u32 %v355_v40, %v351_v37  ;;  %v255_v52 = vrot.slane %v253_v43, 5  ;;  %v364_v53 = vshrl.u32 %v209_v44, 16  ;;  %v367_v54 = vshll.u32 %v209_v44, 16  ;;  %v237_v59 = vld [vmem:[%s2275_s30 + $0x44] sm:$0x1] }
  0x27   : > { %v347_v55 = vrot.slane %v346_v45, 4  ;;  %v250_v56 = vor.u32 %v249_v46, %v246_v42  ;;  %v259_v57 = vrot.slane %v257_v47, 4  ;;  %v265_v58 = vrot.slane %v263_v48, 5  ;;  %v201_v4 = vld [vmem:[%s2275_s30 + $0xc] sm:$0xf] }
  0x28   : > { %v357_v60 = vrot.slane %v356_v51, 4  ;;  %v366_v61 = vrot.slane %v364_v53, 4  ;;  %v369_v62 = vrot.slane %v367_v54, 5  ;;  %v373_v63 = vshll.u32 %v210_v49, 16  ;;  %v202_v9 = vld [vmem:[%s2275_s30 + $0x10] sm:$0xf] }
  0x29   : > { %v352_v0 = vsel %vm2318_vm2, %v347_v55, %v351_v37  ;;  %v251_v1 = vrot.slane %v250_v56, 4  ;;  %v260_v2 = vor.u32 %v259_v57, %v255_v52  ;;  %v377_v3 = vshrl.u32 %v210_v49, 16  ;;  %v233_v15 = vld [vmem:[%s2275_s30 + $0x14] sm:$0x1]  ;;  %v1781_v33 = vld [vmem:[%s2275_s30 + $0x118] sm:$0xf] }
  0x2a   : > { %v362_v5 = vsel %vm2318_vm2, %v357_v60, %v361_v41  ;;  %v370_v6 = vor.u32 %v369_v62, %v366_v61  ;;  %v375_v7 = vrot.slane %v373_v63, 5  ;;  %v383_v8 = vshll.u32 %v237_v59, 16  ;;  %v1780_v32 = vld [vmem:[%s2275_s30 + $0x114] sm:$0xf]  ;;  %v1772_v55 = vld [vmem:[%s2275_s30 + $0xe4] sm:$0xf] }
  0x2b   : > { %v1870_v10 = vcombine.low %v352_v0, %v362_v5  ;;  %v256_v11 = vsel %vm2318_vm2, %v251_v1, %v255_v52  ;;  %v261_v13 = vrot.slane %v260_v2, 4  ;;  %v379_v14 = vrot.slane %v377_v3, 4  ;;  %v1773_v60 = vld [vmem:[%s2275_s30 + $0xe8] sm:$0xf]  ;;  %v1806_v12 = vld [vmem:[%s2275_s30 + $0x110] sm:$0x1] }
  0x2c   : > { %v371_v19 = vrot.slane %v370_v6, 4  ;;  %v385_v24 = vrot.slane %v383_v8, 5  ;;  %v268_v25 = vshrl.u32 %v201_v4, 16  ;;  %v271_v26 = vshll.u32 %v201_v4, 16  ;;  %v1802_v3 = vld [vmem:[%s2275_s30 + $0xe0] sm:$0x1] }
  0x2d   : > { %1031 = vrot.lane.b32.xlu1 %v1870_v10, %s2187_s6  ;;  %v266_v27 = vsel %vm2318_vm2, %v261_v13, %v265_v58  ;;  %v380_v28 = vor.u32 %v379_v14, %v375_v7  ;;  %v277_v29 = vshll.u32 %v202_v9, 16  ;;  %v281_v31 = vshrl.u32 %v202_v9, 16  ;;  %v2054_v10 = vld [vmem:[%s2275_s30 + $0x174] sm:$0xff]  }
  0x2e   : > { %v1866_v34 = vcombine.low %v256_v11, %v266_v27  ;;  %v376_v35 = vsel %vm2318_vm2, %v371_v19, %v375_v7  ;;  %v270_v36 = vrot.slane %v268_v25, 4  ;;  %v273_v37 = vrot.slane %v271_v26, 5 }
  0x2f   : > { %v381_v38 = vrot.slane %v380_v28, 4  ;;  %v279_v39 = vrot.slane %v277_v29, 5  ;;  %v283_v40 = vrot.slane %v281_v31, 4  ;;  %v287_v41 = vshll.u32 %v233_v15, 16  ;;  %v1807_v15 = vld [vmem:[%s2275_s30 + $0x11c] sm:$0x1] }
  0x30   : > { %1023 = vrot.lane.b32.xlu0 %v1866_v34, %s2187_s6  ;;  %v274_v42 = vor.u32 %v273_v37, %v270_v36  ;;  %v598_v43 = vshrl.u32 %v1780_v32, 16  ;;  %v601_v44 = vshll.u32 %v1780_v32, 16  ;;  %v607_v45 = vshll.u32 %v1781_v33, 16  ;;  %v2055_v29 = vld [vmem:[%s2275_s30 + $0x144] sm:$0xff]  }
  0x31   : > { %v386_v46 = vsel %vm2318_vm2, %v381_v38, %v385_v24  ;;  %v284_v47 = vor.u32 %v283_v40, %v279_v39  ;;  %v289_v48 = vrot.slane %v287_v41, 5  ;;  %v611_v49 = vshrl.u32 %v1781_v33, 16  ;;  %v1803_v24 = vld [vmem:[%s2275_s30 + $0xec] sm:$0x1]  ;;  %v2056_v31 = vld [vmem:[%s2275_s30 + $0x180] sm:$0xff]  }
  0x32   : > { %v2344_v51 = vrot.slane %v487_v18, 5  ;;  %v493_v52 = vrot.slane %v491_v30, 4  ;;  %v1871_v53 = vcombine.low %v376_v35, %v386_v46  ;;  %v275_v54 = vrot.slane %v274_v42, 4 }
  0x33   : > { %v285_v56 = vrot.slane %v284_v47, 4  ;;  %v600_v57 = vrot.slane %v598_v43, 4  ;;  %v603_v58 = vrot.slane %v601_v44, 5  ;;  %v1879_v59 = vcombine.low %v1780_v32, %v1781_v33  ;;  %v2385_v43 = vld [vmem:[%s2275_s30 + $0x3c] sm:$0xf]  ;;  %v2057_v44 = vld [vmem:[%s2275_s30 + $0x150] sm:$0xff]  }
  0x34   : > { %1033 = vrot.lane.b32.xlu1 %v1871_v53, %s2187_s6  ;;  %v280_v61 = vsel %vm2318_vm2, %v275_v54, %v279_v39  ;;  %v502_v18 = vshrl.u32 %v1772_v55, 16  ;;  %v505_v62 = vshll.u32 %v1772_v55, 16  ;;  %v511_v63 = vshll.u32 %v1773_v60, 16  ;;  %v2394_v47 = vld [vmem:[%s2275_s30 + $0x40] sm:$0xf] }
  0x35   : > { %v290_v30 = vsel %vm2318_vm2, %v285_v56, %v289_v48  ;;  %v2356_v0 = vrot.slane %v607_v45, 5  ;;  %v613_v1 = vrot.slane %v611_v49, 4  ;;  %v580_v2 = vor.u32 %v2294_v17, %v2292_v16  ;;  %v2404_v53 = vld [vmem:[%s2275_s30 + $0xc] sm:$0xf]  ;;  %v2409_v56 = vld [vmem:[%s2275_s30 + $0x10] sm:$0xf] }
  0x36   : > { %v1867_v4 = vcombine.low %v280_v61, %v290_v30  ;;  %v504_v5 = vrot.slane %v502_v18, 4  ;;  %v515_v6 = vshrl.u32 %v1773_v60, 16  ;;  %v1875_v7 = vcombine.low %v1772_v55, %v1773_v60  ;;  %v2417_v61 = vld [vmem:[%s2275_s30 + $0x48] sm:$0xf]  ;;  %v1821_v30 = vld [vmem:[%s2275_s30 + $0x4c] sm:$0xf] }
  0x37   : > { %v507_v8 = vrot.slane %v505_v62, 5  ;;  %v2361_v9 = vrot.slane %v511_v63, 5  ;;  %v590_v11 = vor.u32 %v2300_v21, %v2298_v20  ;;  %v593_v13 = vshll.u32 %v1806_v12, 16 }
  0x38   : > { %1025 = vrot.lane.b32.xlu0 %v1867_v4, %s2187_s6  ;;  %1089 = vrot.lane.b32.xlu1 %v1879_v59, %s2186_s5  ;;  %v484_v16 = vor.u32 %v2304_v23, %v2302_v22  ;;  %v494_v17 = vor.u32 %v493_v52, %v2344_v51  ;;  %v497_v14 = vshll.u32 %v1802_v3, 16  ;;  %v604_v19 = vor.u32 %v603_v58, %v600_v57 }
  0x39   : > { %v581_v25 = vrot.slane %v580_v2, 4  ;;  %v591_v26 = vrot.slane %v590_v11, 4  ;;  %v595_v27 = vrot.slane %v593_v13, 5  ;;  %v614_v21 = vor.u32 %v613_v1, %v2356_v0  ;;  %v2438_v13 = vld [vmem:[%s2275_s30 + $0x1c] sm:$0xf] }
  0x3a   : > { %v517_v28 = vrot.slane %v515_v6, 4  ;;  %v485_v32 = vrot.slane %v484_v16, 4  ;;  %v495_v33 = vrot.slane %v494_v17, 4  ;;  %v499_v34 = vrot.slane %v497_v14, 5 }
  0x3b   : > { %v605_v22 = vrot.slane %v604_v19, 4  ;;  %v617_v23 = vshll.u32 %v1807_v15, 16  ;;  %v508_v35 = vor.u32 %v507_v8, %v504_v5  ;;  %v615_v36 = vrot.slane %v614_v21, 4  ;;  %v1846_v21 = vld [vmem:[%s2275_s30 + $0x44] sm:$0x1] }
  0x3c   : > { %1081 = vrot.lane.b32.xlu0 %v1875_v7, %s2186_s5  ;;  %1143 = vrot.lane.b32.xlu1 %v2054_v10, %s2188_s7  ;;  %v521_v37 = vshll.u32 %v1803_v24, 16  ;;  %v586_v38 = vsel %vm2318_vm2, %v581_v25, %v2298_v20  ;;  %v596_v39 = vsel %vm2318_vm2, %v591_v26, %v595_v27  ;;  %v518_v42 = vor.u32 %v517_v28, %v2361_v9 }
  0x3d   : > { %v619_v40 = vrot.slane %v617_v23, 5  ;;  %v509_v41 = vrot.slane %v508_v35, 4  ;;  %v490_v45 = vsel %vm2318_vm2, %v485_v32, %v2344_v51  ;;  %v500_v46 = vsel %vm2318_vm2, %v495_v33, %v499_v34  ;;  %v1842_v33 = vld [vmem:[%s2275_s30 + $0x14] sm:$0x1]  ;;  %v1847_v35 = vld [vmem:[%s2275_s30 + $0x50] sm:$0x1] }
  0x3e   : > { %v523_v20 = vrot.slane %v521_v37, 5  ;;  %v1894_v48 = vcombine.low %v586_v38, %v596_v39  ;;  %v610_v49 = vsel %vm2318_vm2, %v605_v22, %v2356_v0  ;;  %v519_v52 = vrot.slane %v518_v42, 4  ;;  %v2425_v0 = vld [vmem:[%s2275_s30 + $0x18] sm:$0xf] }
  0x3f   : > { %v620_v51 = vsel %vm2318_vm2, %v615_v36, %v619_v40  ;;  %v808_v54 = vshrl.u32 %v2385_v43, 16  ;;  %v811_v55 = vshll.u32 %v2385_v43, 16  ;;  %v1890_v57 = vcombine.low %v490_v45, %v500_v46 }
  0x40   : > { %1135 = vrot.lane.b32.xlu0 %v2055_v29, %s2188_s7  ;;  %1145 = vrot.lane.b32.xlu1 %v2056_v31, %s2188_s7  ;;  %v514_v58 = vsel %vm2318_vm2, %v509_v41, %v2361_v9  ;;  %v817_v59 = vshll.u32 %v2394_v47, 16  ;;  %v821_v60 = vshrl.u32 %v2394_v47, 16  ;;  %v1895_v18 = vcombine.low %v610_v49, %v620_v51 }
  0x41   : > { %v524_v62 = vsel %vm2318_vm2, %v519_v52, %v523_v20  ;;  %v712_v63 = vshrl.u32 %v2404_v53, 16  ;;  %v715_v12 = vshll.u32 %v2404_v53, 16  ;;  %v721_v1 = vshll.u32 %v2409_v56, 16 }
  0x42   : > { %v725_v2 = vshrl.u32 %v2409_v56, 16  ;;  %v832_v3 = vshrl.u32 %v2417_v61, 16  ;;  %v835_v4 = vshll.u32 %v2417_v61, 16  ;;  %v810_v5 = vrot.slane %v808_v54, 4  ;;  %v2062_v54 = vld [vmem:[%s2275_s30 + $0xa8] sm:$0xff]  }
  0x43   : > { %v813_v6 = vrot.slane %v811_v55, 5  ;;  %v841_v7 = vshll.u32 %v1821_v30, 16  ;;  %v845_v8 = vshrl.u32 %v1821_v30, 16  ;;  %v2433_v9 = vrot.slane %v817_v59, 5 }
  0x44   : > { %1137 = vrot.lane.b32.xlu0 %v2057_v44, %s2188_s7  ;;  %1183 = vrot.lane.b32.xlu1 %v1894_v48, %s2189_s8  ;;  %v823_v10 = vrot.slane %v821_v60, 4  ;;  %v1902_v11 = vcombine.low %v2385_v43, %v2394_v47  ;;  %v736_v16 = vshrl.u32 %v2425_v0, 16  ;;  %v1891_v17 = vcombine.low %v514_v58, %v524_v62  ;;  %v2464_v47 = vld [vmem:[%s2275_s30 + $0x48] sm:$0xf] }
  0x45   : > { %v714_v14 = vrot.slane %v712_v63, 4  ;;  %v717_v15 = vrot.slane %v715_v12, 5  ;;  %v739_v19 = vshll.u32 %v2425_v0, 16  ;;  %v2444_v24 = vrot.slane %v721_v1, 5  ;;  %v2090_v63 = vld [vmem:[%s2927_s1] sm:$0xff]   ;;  %v2063_v12 = vld [vmem:[%s2275_s30 + $0x78] sm:$0xff]  }
  0x46   : > { %v727_v25 = vrot.slane %v725_v2, 4  ;;  %v834_v26 = vrot.slane %v832_v3, 4  ;;  %v837_v27 = vrot.slane %v835_v4, 5  ;;  %v2447_v28 = vrot.slane %v841_v7, 5  ;;  %v2486_v4 = vld [vmem:[%s2275_s30 + $0x18] sm:$0xf]  ;;  %1951 = vmatprep.subr.bf16.mxu0 %v2090_v63  ;;  %1973 = vmatprep.subr.bf16.mxu1 %v2090_v63 }
  0x47   : > { %v847_v29 = vrot.slane %v845_v8, 4  ;;  %v745_v31 = vshll.u32 %v2438_v13, 16  ;;  %v749_v32 = vshrl.u32 %v2438_v13, 16  ;;  %v1898_v34 = vcombine.low %v2404_v53, %v2409_v56  ;;  %v2469_v53 = vld [vmem:[%s2275_s30 + $0x4c] sm:$0xf]  ;;  %1952 = vmatpush3.bf16.msra.mxu0 %v2090_v63  ;;  %1976 = vmatpush3.bf16.msra.mxu1 %v2090_v63 }
  0x48   : > { %1175 = vrot.lane.b32.xlu0 %v1890_v57, %s2189_s8  ;;  %1185 = vrot.lane.b32.xlu1 %v1895_v18, %s2189_s8  ;;  %v1903_v22 = vcombine.low %v2417_v61, %v1821_v30  ;;  %v738_v23 = vrot.slane %v736_v16, 4  ;;  %v741_v36 = vrot.slane %v739_v19, 5  ;;  %v814_v37 = vor.u32 %v813_v6, %v810_v5  ;;  %v1843_v61 = vld [vmem:[%s2275_s30 + $0x20] sm:$0x1]  ;;  %v2064_v30 = vld [vmem:[%s2275_s30 + $0xb4] sm:$0xff]  }
  0x49   : > { %v824_v38 = vor.u32 %v823_v10, %v2433_v9  ;;  %v827_v39 = vshll.u32 %v1846_v21, 16  ;;  %v718_v40 = vor.u32 %v717_v15, %v714_v14  ;;  %v728_v41 = vor.u32 %v727_v25, %v2444_v24  ;;  %v2494_v7 = vld [vmem:[%s2275_s30 + $0x1c] sm:$0xf]  ;;  %v2497_v8 = vld [vmem:[%s2275_s30 + $0x54] sm:$0xf]  ;;  %v2091_v10 = vld [vmem:[%s2927_s1 + $0x8] sm:$0xff]  }
  0x4a   : > { %v731_v42 = vshll.u32 %v1842_v33, 16  ;;  %v838_v43 = vor.u32 %v837_v27, %v834_v26  ;;  %v2460_v44 = vrot.slane %v745_v31, 5  ;;  %v751_v45 = vrot.slane %v749_v32, 4  ;;  %v2513_v16 = vld [vmem:[%s2275_s30 + $0x58] sm:$0xf]  ;;  %1953 = vmatprep.subr.bf16.mxu0 %v2091_v10  ;;  %1974 = vmatprep.subr.bf16.mxu1 %v2091_v10 }
  0x4b   : > { %v848_v46 = vor.u32 %v847_v29, %v2447_v28  ;;  %v851_v20 = vshll.u32 %v1847_v35, 16  ;;  %v1899_v48 = vcombine.low %v2425_v0, %v2438_v13  ;;  %v815_v49 = vrot.slane %v814_v37, 4  ;;  %v238_v25 = vld [vmem:[%s2275_s30 + $0x50] sm:$0x1]  ;;  %1954 = vmatpush3.bf16.msra.mxu0 %v2091_v10  ;;  %1977 = vmatpush3.bf16.msra.mxu1 %v2091_v10 }
  0x4c   : > { %1177 = vrot.lane.b32.xlu0 %v1891_v17, %s2189_s8  ;;  %1239 = vrot.lane.b32.xlu1 %v1902_v11, %s2190_s9  ;;  %v825_v51 = vrot.slane %v824_v38, 4  ;;  %v829_v52 = vrot.slane %v827_v39, 5  ;;  %v719_v55 = vrot.slane %v718_v40, 4  ;;  %v729_v56 = vrot.slane %v728_v41, 4 }
  0x4d   : > { %v733_v57 = vrot.slane %v731_v42, 5  ;;  %v839_v58 = vrot.slane %v838_v43, 4  ;;  %v849_v59 = vrot.slane %v848_v46, 4  ;;  %v853_v60 = vrot.slane %v851_v20, 5  ;;  %v2539_v43 = vld [vmem:[%s2275_s30 + $0x28] sm:$0xf] }
  0x4e   : > { %v742_v18 = vor.u32 %v741_v36, %v738_v23  ;;  %v752_v62 = vor.u32 %v751_v45, %v2460_v44  ;;  %v388_v0 = vshrl.u32 %v2464_v47, 16  ;;  %v391_v1 = vshll.u32 %v2464_v47, 16  ;;  %v2066_v45 = vld [vmem:[%s2275_s30 + $0xb4] sm:$0xff]  }
  0x4f   : > { %v397_v2 = vshll.u32 %v2469_v53, 16  ;;  %v401_v3 = vshrl.u32 %v2469_v53, 16  ;;  %v820_v5 = vsel %vm2318_vm2, %v815_v49, %v2433_v9  ;;  %v830_v6 = vsel %vm2318_vm2, %v825_v51, %v829_v52  ;;  %v234_v51 = vld [vmem:[%s2275_s30 + $0x20] sm:$0x1] }
  0x50   : > { %1231 = vrot.lane.b32.xlu0 %v1898_v34, %s2190_s9  ;;  %1241 = vrot.lane.b32.xlu1 %v1903_v22, %s2190_s9  ;;  %v724_v9 = vsel %vm2318_vm2, %v719_v55, %v2444_v24  ;;  %v734_v11 = vsel %vm2318_vm2, %v729_v56, %v733_v57  ;;  %v844_v13 = vsel %vm2318_vm2, %v839_v58, %v2447_v28  ;;  %v2517_v14 = vrot.slane %v742_v18, 4  ;;  %v2065_v24 = vld [vmem:[%s2275_s30 + $0x84] sm:$0xff]   ;;  %v239_v57 = vld [vmem:[%s2275_s30 + $0x5c] sm:$0x1] }
  0x51   : > { %v854_v17 = vsel %vm2318_vm2, %v849_v59, %v853_v60  ;;  %v2519_v15 = vrot.slane %v752_v62, 4  ;;  %v755_v19 = vshll.u32 %v1843_v61, 16  ;;  %v390_v26 = vrot.slane %v388_v0, 4  ;;  %v2530_v34 = vld [vmem:[%s2275_s30 + $0x24] sm:$0xf] }
  0x52   : > { %v393_v27 = vrot.slane %v391_v1, 5  ;;  %v2523_v21 = vrot.slane %v397_v2, 5  ;;  %v403_v28 = vrot.slane %v401_v3, 4  ;;  %v292_v29 = vshrl.u32 %v2486_v4, 16  ;;  %v2067_v3 = vld [vmem:[%s2275_s30 + $0x84] sm:$0xff]  }
  0x53   : > { %v295_v31 = vshll.u32 %v2486_v4, 16  ;;  %v301_v32 = vshll.u32 %v2494_v7, 16  ;;  %v305_v33 = vshrl.u32 %v2494_v7, 16  ;;  %v1918_v22 = vcombine.low %v820_v5, %v830_v6 }
  0x54   : > { %1233 = vrot.lane.b32.xlu0 %v1899_v48, %s2190_s9  ;;  %1295 = vrot.lane.b32.xlu1 %v2062_v54, %s2191_s21  ;;  %v412_v23 = vshrl.u32 %v2497_v8, 16  ;;  %v415_v35 = vshll.u32 %v2497_v8, 16  ;;  %v1914_v36 = vcombine.low %v724_v9, %v734_v11  ;;  %v757_v37 = vrot.slane %v755_v19, 5  ;;  %v2068_v19 = vld [vmem:[%s2275_s30 + $0xc0] sm:$0xff]  }
  0x55   : > { %v421_v38 = vshll.u32 %v2513_v16, 16  ;;  %v1919_v39 = vcombine.low %v844_v13, %v854_v17  ;;  %v394_v40 = vor.u32 %v393_v27, %v390_v26  ;;  %v407_v41 = vshll.u32 %v238_v25, 16 }
  0x56   : > { %v425_v42 = vshrl.u32 %v2513_v16, 16  ;;  %v404_v46 = vor.u32 %v403_v28, %v2523_v21  ;;  %v294_v20 = vrot.slane %v292_v29, 4  ;;  %v297_v48 = vrot.slane %v295_v31, 5 }
  0x57   : > { %v2543_v49 = vrot.slane %v301_v32, 5  ;;  %v307_v52 = vrot.slane %v305_v33, 4  ;;  %v414_v54 = vrot.slane %v412_v23, 4  ;;  %v417_v55 = vrot.slane %v415_v35, 5  ;;  %v2069_v35 = vld [vmem:[%s2275_s30 + $0x90] sm:$0xff]  }
  0x58   : > { %1287 = vrot.lane.b32.xlu0 %v2063_v12, %s2191_s21  ;;  %1297 = vrot.lane.b32.xlu1 %v2064_v30, %s2191_s21  ;;  %v316_v56 = vshrl.u32 %v2530_v34, 16  ;;  %v423_v58 = vrot.slane %v421_v38, 5  ;;  %v427_v59 = vrot.slane %v425_v42, 4  ;;  %v319_v60 = vshll.u32 %v2530_v34, 16 }
  0x59   : > { %v325_v61 = vshll.u32 %v2539_v43, 16  ;;  %v748_v18 = vsel %vm2318_vm2, %v2517_v14, %v2460_v44  ;;  %v758_v62 = vsel %vm2318_vm2, %v2519_v15, %v757_v37  ;;  %v395_v63 = vrot.slane %v394_v40, 4  ;;  %v235_v14 = vld [vmem:[%s2275_s30 + $0x2c] sm:$0x1] }
  0x5a   : > { %v409_v12 = vrot.slane %v407_v41, 5  ;;  %v405_v30 = vrot.slane %v404_v46, 4  ;;  %v298_v0 = vor.u32 %v297_v48, %v294_v20  ;;  %v311_v1 = vshll.u32 %v234_v51, 16  ;;  %v1783_v46 = vld [vmem:[%s2275_s30 + $0x124] sm:$0xf] }
  0x5b   : > { %v329_v2 = vshrl.u32 %v2539_v43, 16  ;;  %v308_v44 = vor.u32 %v307_v52, %v2543_v49  ;;  %v418_v5 = vor.u32 %v417_v55, %v414_v54  ;;  %v431_v6 = vshll.u32 %v239_v57, 16  ;;  %v1774_v57 = vld [vmem:[%s2275_s30 + $0xf0] sm:$0xf] }
  0x5c   : > { %1289 = vrot.lane.b32.xlu0 %v2065_v24, %s2191_s21  ;;  %1335 = vrot.lane.b32.xlu1 %v1918_v22, %s2192_s23  ;;  %v318_v10 = vrot.slane %v316_v56, 4  ;;  %v428_v9 = vor.u32 %v427_v59, %v423_v58  ;;  %v321_v11 = vrot.slane %v319_v60, 5  ;;  %v327_v13 = vrot.slane %v325_v61, 5 }
  0x5d   : > { %v331_v17 = vrot.slane %v329_v2, 4  ;;  %v1915_v15 = vcombine.low %v748_v18, %v758_v62  ;;  %v400_v25 = vsel %vm2318_vm2, %v395_v63, %v2523_v21  ;;  %v410_v24 = vsel %vm2318_vm2, %v405_v30, %v409_v12  ;;  %v1784_v30 = vld [vmem:[%s2275_s30 + $0x12c] sm:$0xf] }
  0x5e   : > { %v313_v26 = vrot.slane %v311_v1, 5  ;;  %v299_v27 = vrot.slane %v298_v0, 4  ;;  %v309_v28 = vrot.slane %v308_v44, 4  ;;  %v419_v29 = vrot.slane %v418_v5, 4  ;;  %v1776_v5 = vld [vmem:[%s2275_s30 + $0xfc] sm:$0xf] }
  0x5f   : > { %v433_v31 = vrot.slane %v431_v6, 5  ;;  %v429_v32 = vrot.slane %v428_v9, 4  ;;  %v322_v33 = vor.u32 %v321_v11, %v318_v10  ;;  %v332_v22 = vor.u32 %v331_v17, %v327_v13 }
  0x60   : > { %1327 = vrot.lane.b32.xlu0 %v1914_v36, %s2192_s23  ;;  %995 = vrot.lane.b32.xlu1 %v2066_v45, %s2185_s4  ;;  %v335_v23 = vshll.u32 %v235_v14, 16  ;;  %v1872_v21 = vcombine.low %v400_v25, %v410_v24  ;;  %v304_v36 = vsel %vm2318_vm2, %v299_v27, %v2543_v49  ;;  %v314_v37 = vsel %vm2318_vm2, %v309_v28, %v313_v26  ;;  %v1782_v45 = vld [vmem:[%s2275_s30 + $0x120] sm:$0xf]  ;;  %v1808_v25 = vld [vmem:[%s2275_s30 + $0x128] sm:$0x1] }
  0x61   : > { %v424_v38 = vsel %vm2318_vm2, %v419_v29, %v423_v58  ;;  %v323_v40 = vrot.slane %v322_v33, 4  ;;  %v333_v41 = vrot.slane %v332_v22, 4  ;;  %v622_v20 = vshrl.u32 %v1782_v45, 16  ;;  %v1775_v58 = vld [vmem:[%s2275_s30 + $0xf4] sm:$0xf] }
  0x62   : > { %v337_v42 = vrot.slane %v335_v23, 5  ;;  %v625_v48 = vshll.u32 %v1782_v45, 16  ;;  %v631_v51 = vshll.u32 %v1783_v46, 16  ;;  %v1868_v49 = vcombine.low %v304_v36, %v314_v37  ;;  %v1804_v36 = vld [vmem:[%s2275_s30 + $0xf8] sm:$0x1] }
  0x63   : > { %v635_v54 = vshrl.u32 %v1783_v46, 16  ;;  %v328_v55 = vsel %vm2318_vm2, %v323_v40, %v327_v13  ;;  %v526_v59 = vshrl.u32 %v1774_v57, 16  ;;  %v529_v60 = vshll.u32 %v1774_v57, 16  ;;  %v1777_v13 = vld [vmem:[%s2275_s30 + $0x100] sm:$0xf] }
  0x64   : > { %987 = vrot.lane.b32.xlu0 %v2067_v3, %s2185_s4  ;;  %1337 = vrot.lane.b32.xlu1 %v1919_v39, %s2192_s23  ;;  %v434_v39 = vsel %vm2318_vm2, %v429_v32, %v433_v31  ;;  %v338_v56 = vsel %vm2318_vm2, %v333_v41, %v337_v42  ;;  %v535_v61 = vshll.u32 %v1775_v58, 16  ;;  %v624_v18 = vrot.slane %v622_v20, 4  ;;  %v1785_v3 = vld [vmem:[%s2275_s30 + $0x130] sm:$0xf] }
  0x65   : > { %v1873_v52 = vcombine.low %v424_v38, %v434_v39  ;;  %v627_v62 = vrot.slane %v625_v48, 5  ;;  %v2595_v63 = vrot.slane %v631_v51, 5  ;;  %v539_v12 = vshrl.u32 %v1775_v58, 16  ;;  %v1809_v39 = vld [vmem:[%s2275_s30 + $0x134] sm:$0x1] }
  0x66   : > { %v1869_v0 = vcombine.low %v328_v55, %v338_v56  ;;  %v637_v1 = vrot.slane %v635_v54, 4  ;;  %v1880_v2 = vcombine.low %v1782_v45, %v1783_v46  ;;  %v646_v44 = vshrl.u32 %v1784_v30, 16  ;;  %v2074_v46 = vld [vmem:[%s2275_s30 + $0x18c] sm:$0xff]  }
  0x67   : > { %v1876_v6 = vcombine.low %v1774_v57, %v1775_v58  ;;  %v649_v10 = vshll.u32 %v1784_v30, 16  ;;  %v655_v9 = vshll.u32 %v1785_v3, 16  ;;  %v659_v11 = vshrl.u32 %v1785_v3, 16 }
  0x68   : > { %1329 = vrot.lane.b32.xlu0 %v1915_v15, %s2192_s23  ;;  %997 = vrot.lane.b32.xlu1 %v2068_v19, %s2185_s4  ;;  %v528_v17 = vrot.slane %v526_v59, 4  ;;  %v531_v14 = vrot.slane %v529_v60, 5  ;;  %v2603_v15 = vrot.slane %v535_v61, 5  ;;  %v550_v19 = vshrl.u32 %v1776_v5, 16  ;;  %v2075_v61 = vld [vmem:[%s2275_s30 + $0x15c] sm:$0xff]  }
  0x69   : > { %v541_v24 = vrot.slane %v539_v12, 4  ;;  %v553_v26 = vshll.u32 %v1776_v5, 16  ;;  %v559_v27 = vshll.u32 %v1777_v13, 16  ;;  %v563_v28 = vshrl.u32 %v1777_v13, 16 }
  0x6a   : > { %v648_v29 = vrot.slane %v646_v44, 4  ;;  %v1881_v31 = vcombine.low %v1784_v30, %v1785_v3  ;;  %v628_v32 = vor.u32 %v627_v62, %v624_v18  ;;  %v638_v33 = vor.u32 %v637_v1, %v2595_v63  ;;  %v2076_v18 = vld [vmem:[%s2275_s30 + $0x198] sm:$0xff]  }
  0x6b   : > { %v651_v22 = vrot.slane %v649_v10, 5  ;;  %v2609_v23 = vrot.slane %v655_v9, 5  ;;  %v552_v37 = vrot.slane %v550_v19, 4  ;;  %v1877_v38 = vcombine.low %v1776_v5, %v1777_v13  ;;  %v1822_v13 = vld [vmem:[%s2275_s30 + $0x54] sm:$0xf] }
  0x6c   : > { %989 = vrot.lane.b32.xlu0 %v2069_v35, %s2185_s4  ;;  %1035 = vrot.lane.b32.xlu1 %v1872_v21, %s2187_s6  ;;  %v661_v21 = vrot.slane %v659_v11, 4  ;;  %v641_v35 = vshll.u32 %v1808_v25, 16  ;;  %v555_v40 = vrot.slane %v553_v26, 5  ;;  %v2613_v41 = vrot.slane %v559_v27, 5  ;;  %v1823_v25 = vld [vmem:[%s2275_s30 + $0x58] sm:$0xf] }
  0x6d   : > { %v565_v42 = vrot.slane %v563_v28, 4  ;;  %v532_v45 = vor.u32 %v531_v14, %v528_v17  ;;  %v629_v20 = vrot.slane %v628_v32, 4  ;;  %v639_v48 = vrot.slane %v638_v33, 4  ;;  %v2647_v28 = vld [vmem:[%s2275_s30 + $0x24] sm:$0xf] }
  0x6e   : > { %v542_v51 = vor.u32 %v541_v24, %v2603_v15  ;;  %v643_v54 = vrot.slane %v641_v35, 5  ;;  %v652_v55 = vor.u32 %v651_v22, %v648_v29  ;;  %v662_v56 = vor.u32 %v661_v21, %v2609_v23  ;;  %v2655_v32 = vld [vmem:[%s2275_s30 + $0x28] sm:$0xf] }
  0x6f   : > { %v665_v57 = vshll.u32 %v1809_v39, 16  ;;  %v556_v58 = vor.u32 %v555_v40, %v552_v37  ;;  %v566_v59 = vor.u32 %v565_v42, %v2613_v41  ;;  %v634_v62 = vsel %vm2318_vm2, %v629_v20, %v2595_v63  ;;  %v2077_v63 = vld [vmem:[%s2275_s30 + $0x168] sm:$0xff]   ;;  %v1825_v39 = vld [vmem:[%s2275_s30 + $0x64] sm:$0xf] }
  0x70   : > { %1027 = vrot.lane.b32.xlu0 %v1868_v49, %s2187_s6  ;;  %1037 = vrot.lane.b32.xlu1 %v1873_v52, %s2187_s6  ;;  %v545_v49 = vshll.u32 %v1804_v36, 16  ;;  %v1805_v52 = vld [vmem:[%s2275_s30 + $0x104] sm:$0x1]  ;;  %v533_v12 = vrot.slane %v532_v45, 4  ;;  %v543_v30 = vrot.slane %v542_v51, 4  ;;  %v644_v1 = vsel %vm2318_vm2, %v639_v48, %v643_v54 }
  0x71   : > { %v569_v60 = vshll.u32 %v1805_v52, 16  ;;  %v663_v3 = vrot.slane %v662_v56, 4  ;;  %v667_v44 = vrot.slane %v665_v57, 5  ;;  %v557_v5 = vrot.slane %v556_v58, 4  ;;  %v1824_v36 = vld [vmem:[%s2275_s30 + $0x60] sm:$0xf] }
  0x72   : > { %v1896_v9 = vcombine.low %v634_v62, %v644_v1  ;;  %v538_v11 = vsel %vm2318_vm2, %v533_v12, %v2603_v15  ;;  %v856_v24 = vshrl.u32 %v1822_v13, 16  ;;  %v859_v26 = vshll.u32 %v1822_v13, 16  ;;  %v2094_v20 = vld [vmem:[%s2927_s1 + $0x10] ss:$0 sps:$4 sm:$0x33]  }
  0x73   : > { %v571_v10 = vrot.slane %v569_v60, 5  ;;  %v668_v19 = vsel %vm2318_vm2, %v663_v3, %v667_v44  ;;  %v865_v27 = vshll.u32 %v1823_v25, 16  ;;  %v562_v15 = vsel %vm2318_vm2, %v557_v5, %v2613_v41  ;;  %v1817_v3 = vld [vmem:[%s2275_s30 + $0x34] sm:$0xf]  ;;  %1979 = vmatprep.subr.msk.bf16.mxu0 %vm1531_vm3, %v2094_v20  ;;  %1980 = vmatprep.subr.msk.bf16.mxu1 %vm1531_vm3, %v2094_v20 }
  0x74   : > { %1029 = vrot.lane.b32.xlu0 %v1869_v0, %s2187_s6  ;;  %1091 = vrot.lane.b32.xlu1 %v1880_v2, %s2186_s5  ;;  %v547_v0 = vrot.slane %v545_v49, 5  ;;  %v653_v2 = vrot.slane %v652_v55, 4  ;;  %v760_v33 = vshrl.u32 %v2647_v28, 16  ;;  %v763_v21 = vshll.u32 %v2647_v28, 16 }
  0x75   : > { %v769_v35 = vshll.u32 %v2655_v32, 16  ;;  %v858_v37 = vrot.slane %v856_v24, 4  ;;  %v880_v40 = vshrl.u32 %v1824_v36, 16  ;;  %v861_v42 = vrot.slane %v859_v26, 5  ;;  %v1849_v26 = vld [vmem:[%s2275_s30 + $0x68] sm:$0x1] }
  0x76   : > { %v548_v17 = vsel %vm2318_vm2, %v543_v30, %v547_v0  ;;  %v658_v14 = vsel %vm2318_vm2, %v653_v2, %v2609_v23  ;;  %v2665_v45 = vrot.slane %v865_v27, 5  ;;  %v762_v51 = vrot.slane %v760_v33, 4 }
  0x77   : > { %v1892_v22 = vcombine.low %v538_v11, %v548_v17  ;;  %v1897_v23 = vcombine.low %v658_v14, %v668_v19  ;;  %v883_v49 = vshll.u32 %v1824_v36, 16  ;;  %v889_v52 = vshll.u32 %v1825_v39, 16  ;;  %v1844_v11 = vld [vmem:[%s2275_s30 + $0x2c] sm:$0x1] }
  0x78   : > { %1083 = vrot.lane.b32.xlu0 %v1876_v6, %s2186_s5  ;;  %1093 = vrot.lane.b32.xlu1 %v1881_v31, %s2186_s5  ;;  %v567_v6 = vrot.slane %v566_v59, 4  ;;  %v869_v31 = vshrl.u32 %v1823_v25, 16  ;;  %v765_v54 = vrot.slane %v763_v21, 5  ;;  %v2672_v55 = vrot.slane %v769_v35, 5 }
  0x79   : > { %v1900_v56 = vcombine.low %v2647_v28, %v2655_v32  ;;  %v893_v57 = vshrl.u32 %v1825_v39, 16  ;;  %v882_v59 = vrot.slane %v880_v40, 4  ;;  %v1905_v60 = vcombine.low %v1824_v36, %v1825_v39  ;;  %v1845_v39 = vld [vmem:[%s2275_s30 + $0x38] sm:$0x1] }
  0x7a   : > { %v572_v29 = vsel %vm2318_vm2, %v567_v6, %v571_v10  ;;  %v871_v48 = vrot.slane %v869_v31, 4  ;;  %v1856_v62 = vcombine.low %v2464_v47, %v2469_v53  ;;  %v1852_v30 = vcombine.low %v2486_v4, %v2494_v7  ;;  %v2082_v31 = vld [vmem:[%s2275_s30 + $0xc0] sm:$0xff]  }
  0x7b   : > { %v1893_v41 = vcombine.low %v562_v15, %v572_v29  ;;  %v1857_v0 = vcombine.low %v2497_v8, %v2513_v16  ;;  %v885_v1 = vrot.slane %v883_v49, 5  ;;  %v2684_v2 = vrot.slane %v889_v52, 5 }
  0x7c   : > { %1085 = vrot.lane.b32.xlu0 %v1877_v38, %s2186_s5  ;;  %1147 = vrot.lane.b32.xlu1 %v2074_v46, %s2188_s7  ;;  %v773_v38 = vshrl.u32 %v2655_v32, 16  ;;  %v1904_v46 = vcombine.low %v1822_v13, %v1823_v25  ;;  %v1533_v44 = vsel %vm1531_vm3, %v2094_v20, 0  ;;  %v1853_v5 = vcombine.low %v2530_v34, %v2539_v43  ;;  %v2086_v20 = vld [vmem:[%s2275_s30 + $0xcc] sm:$0xff]   ;;  %s2850_s5 = scalar_lea.vmem [#allocation2], %s1752_s29 }
  0x7d   : > { %v895_v6 = vrot.slane %v893_v57, 4  ;;  %v862_v10 = vor.u32 %v861_v42, %v858_v37  ;;  %v793_v17 = vshll.u32 %v1817_v3, 16  ;;  %v797_v14 = vshrl.u32 %v1817_v3, 16  ;;  %1956 = vmatpush3.bf16.msra.mxu0 %v1533_v44  ;;  %1978 = vmatpush3.bf16.msra.mxu1 %v1533_v44 }
  0x7e   : > { %v775_v58 = vrot.slane %v773_v38, 4  ;;  %v766_v27 = vor.u32 %v765_v54, %v762_v51  ;;  %v779_v15 = vshll.u32 %v1844_v11, 16  ;;  %v886_v29 = vor.u32 %v885_v1, %v882_v59 }
  0x7f   : > { %v863_v32 = vrot.slane %v862_v10, 4  ;;  %v795_v35 = vrot.slane %v793_v17, 5  ;;  %v799_v36 = vrot.slane %v797_v14, 4  ;;  %v899_v37 = vshll.u32 %v1849_v26, 16 }
  0x80   : > { %1139 = vrot.lane.b32.xlu0 %v2075_v61, %s2188_s7  ;;  %1149 = vrot.lane.b32.xlu1 %v2076_v18, %s2188_s7  ;;  %v1816_v61 = vld [vmem:[%s2275_s30 + $0x30] sm:$0xf]  ;;  %v1848_v18 = vld [vmem:[%s2275_s30 + $0x5c] sm:$0x1]  ;;  %v776_v28 = vor.u32 %v775_v58, %v2672_v55  ;;  %v767_v40 = vrot.slane %v766_v27, 4  ;;  %v781_v42 = vrot.slane %v779_v15, 5 }
  0x81   : > { %v784_v12 = vshrl.u32 %v1816_v61, 16  ;;  %v787_v13 = vshll.u32 %v1816_v61, 16  ;;  %v1901_v25 = vcombine.low %v1816_v61, %v1817_v3  ;;  %v868_v51 = vsel %vm2318_vm2, %v863_v32, %v2665_v45  ;;  %v2087_v61 = vld [vmem:[%s2275_s30 + $0x9c] sm:$0xff]  }
  0x82   : > { %v887_v52 = vrot.slane %v886_v29, 4  ;;  %v800_v58 = vor.u32 %v799_v36, %v795_v35  ;;  %v803_v59 = vshll.u32 %v1845_v39, 16  ;;  %v2098_v36 = vld [vmem:[%s2275_s30 + $0x34] sm:$0xf] }
  0x83   : > { %v786_v19 = vrot.slane %v784_v12, 4  ;;  %v789_v21 = vrot.slane %v787_v13, 5 }
  0x84   : > { %1141 = vrot.lane.b32.xlu0 %v2077_v63, %s2188_s7  ;;  %1187 = vrot.lane.b32.xlu1 %v1896_v9, %s2189_s8  ;;  %v872_v63 = vor.u32 %v871_v48, %v2665_v45  ;;  %v875_v9 = vshll.u32 %v1848_v18, 16  ;;  %v892_v1 = vsel %vm2318_vm2, %v887_v52, %v2684_v2  ;;  %s1939_s7 = sshll.u32 %s2175_s15, 11  ;;  %s2879_s15 = scalar_lea.sflag [#allocation3], %s185_s28 }
  0x85   : > { %v790_v57 = vor.u32 %v789_v21, %v786_v19  ;;  %s2870_s11 = scalar_lea.hbm %s2929_s3, %s1939_s7 }
  0x86   : > { %v873_v33 = vrot.slane %v872_v63, 4 }
  0x87   : > { %v791_v44 = vrot.slane %v790_v57, 4 }
  0x88   : > { %1179 = vrot.lane.b32.xlu0 %v1892_v22, %s2189_s8  ;;  %1189 = vrot.lane.b32.xlu1 %v1897_v23, %s2189_s8  ;;  %v877_v22 = vrot.slane %v875_v9, 5  ;;  %v896_v23 = vor.u32 %v895_v6, %v2684_v2  ;;  %v801_v6 = vrot.slane %v800_v58, 4 }
  0x89   : > { %v796_v11 = vsel %vm2318_vm2, %v791_v44, %v795_v35  ;;  %v2097_v35 = vld [vmem:[%s2275_s30 + $0x30] sm:$0xf] }
  0x8a   : > { %v878_v49 = vsel %vm2318_vm2, %v873_v33, %v877_v22  ;;  %v897_v54 = vrot.slane %v896_v23, 4 }
  0x8b   : > { %v1920_v45 = vcombine.low %v868_v51, %v878_v49 }
  0x8c   : > { %1181 = vrot.lane.b32.xlu0 %v1893_v41, %s2189_s8  ;;  %1243 = vrot.lane.b32.xlu1 %v1904_v46, %s2190_s9  ;;  %v777_v41 = vrot.slane %v776_v28, 4  ;;  %v2083_v46 = vld [vmem:[%s2275_s30 + $0x90] sm:$0xff]   ;;  %s1665_s8 = sshll.u32 %s2850_s5, 4  ;;  %s2873_s8 = int_to_ptr.vmem [resolvable:$true] %s1665_s8 }
  0x8d   : > { %s2105_s18 = scalar_lea.vmem %s2873_s8, 2048 }
  0x8e   : > { %v2693_v24 = vpop.permute.xlu1 %985  ;;  %v2701_v38 = vpop.permute.xlu0 %983  ;;  %v782_v12 = vsel %vm2318_vm2, %v777_v41, %v781_v42  ;;  %v2099_v41 = vld [vmem:[%s2275_s30] sm:$0xf]  ;;  %v2100_v42 = vld [vmem:[%s2275_s30 + $0x4] sm:$0xf]  ;;  %p2106_p12 = scmp.ne.s32.totalorder %s2873_s8, %s2105_s18 }
  0x90   : > { %1235 = vrot.lane.b32.xlu0 %v1900_v56, %s2190_s9  ;;  %1245 = vrot.lane.b32.xlu1 %v1905_v60, %s2190_s9  ;;  %v901_v56 = vrot.slane %v899_v37, 5  ;;  %v772_v60 = vsel %vm2318_vm2, %v767_v40, %v2672_v55  ;;  %v805_v55 = vrot.slane %v803_v59, 5  ;;  %v1854_v37 = vcombine.low %v2097_v35, %v2098_v36  ;;  %p2107_p13 = pnand %p2106_p12, %p2255_p4 }
  0x91   : > { %v1916_v63 = vcombine.low %v772_v60, %v782_v12 }
  0x92   : > { %v2708_v48 = vpop.permute.xlu1 %993  ;;  %v992_v18 = vpop.permute.xlu0 %991  ;;  %v902_v3 = vsel %vm2318_vm2, %v897_v54, %v901_v56  ;;  %v806_v13 = vsel %vm2318_vm2, %v801_v6, %v805_v55  ;;  %p2108_p0 = pneg %p2107_p13 }
  0x93   : > { %v1921_v9 = vcombine.low %v892_v1, %v902_v3  ;;  %v1917_v17 = vcombine.low %v796_v11, %v806_v13 }
  0x94   : > { %1237 = vrot.lane.b32.xlu0 %v1901_v25, %s2190_s9  ;;  %1299 = vrot.lane.b32.xlu1 %v2082_v31, %s2191_s21 }
  0x96   : > { %v1088_v10 = vpop.permute.xlu1 %1087  ;;  %v1080_v2 = vpop.permute.xlu0 %1079 }
  0x98   : > { %1291 = vrot.lane.b32.xlu0 %v2083_v46, %s2191_s21  ;;  %1301 = vrot.lane.b32.xlu1 %v2086_v20, %s2191_s21  ;;  %v1850_v46 = vcombine.low %v2099_v41, %v2100_v42  ;;  %v1358_v20 = vsel %vm1343_vm5, %v1854_v37, %v992_v18  ;;  %v2102_v18 = vld [vmem:[%s2275_s30 + $0x40] sm:$0xf] }
  0x9a   : > { %v1346_v54 = vsel %vm1343_vm5, %v1850_v46, %v2701_v38 }
  0x9c   : > { %1293 = vrot.lane.b32.xlu0 %v2087_v61, %s2191_s21  ;;  %1339 = vrot.lane.b32.xlu1 %v1920_v45, %s2192_s23  ;;  %v2101_v61 = vld [vmem:[%s2275_s30 + $0x3c] sm:$0xf]  ;;  %s2109_s21 = sshll.u32 %s2193_s19, 4  ;;  %s2110_s21 = int_to_ptr.vmem [resolvable:$false] %s2109_s21 }
  0x9d   : > { %v1855_v45 = vcombine.low %v2101_v61, %v2102_v18  ;;  %p2112_p1 = scmp.lt.s32.totalorder %s2873_s8, %s2110_s21 }
  0x9f   : > { %v1032_v14 = vpop.permute.xlu1 %1031  ;;  %v1361_v13 = vsel %vm1343_vm5, %v1855_v45, %v2708_v48 }
  0xa0   : > { %1331 = vrot.lane.b32.xlu0 %v1916_v63, %s2192_s23  ;;  %1341 = vrot.lane.b32.xlu1 %v1921_v9, %s2192_s23  ;;  %v1378_v52 = vsel %vm1368_vm4, %v1358_v20, %v1032_v14  ;;  %v2103_v63 = vld [vmem:[%s2275_s30 + $0xc] sm:$0xf]  ;;  %v2104_v9 = vld [vmem:[%s2275_s30 + $0x10] sm:$0xf] }
  0xa1   : > { %v1395_v56 = vsel %vm1385_vm6, %v1378_v52, %v1088_v10  ;;  %v1851_v11 = vcombine.low %v2103_v63, %v2104_v9 }
  0xa2   : > { %v1024_v19 = vpop.permute.xlu0 %1023 }
  0xa3   : > { %v1370_v59 = vsel %vm1368_vm4, %v1346_v54, %v1024_v19  ;;  %v1349_v48 = vsel %vm1343_vm5, %v1851_v11, %v2693_v24 }
  0xa4   : > { %1333 = vrot.lane.b32.xlu0 %v1917_v17, %s2192_s23  ;;  %v1387_v1 = vsel %vm1385_vm6, %v1370_v59, %v1080_v2  ;;  %s2111_s23 = scalar_lea.vmem %s2110_s21, 4096 }
  0xa5   : > { %p2113_p2 = scmp.lt.s32.totalorder %s2111_s23, %s2105_s18 }
  0xa6   : > { %v1034_v25 = vpop.permute.xlu1 %1033 }
  0xa7   : > { %v1380_v2 = vsel %vm1368_vm4, %v1361_v13, %v1034_v25  ;;  %p2114_p3 = por %p2113_p2, %p2112_p1 }
  0xa9   : > { %p2115_p5 = pnand %p2114_p3, %p2108_p0 }
  0xaa   : > { %v2737_v26 = vpop.permute.xlu0 %1025  ;;  %v1090_v27 = vpop.permute.xlu1 %1089 }
  0xab   : > { %v1397_v19 = vsel %vm1385_vm6, %v1380_v2, %v1090_v27  ;;  %v1372_v25 = vsel %vm1368_vm4, %v1349_v48, %v2737_v26 }
  0xae   : > { %v2739_v28 = vpop.permute.xlu0 %1081  ;;  %v1144_v50 = vpop.permute.xlu1 %1143 }
  0xaf   : > { %v1412_v60 = vsel %vm1402_vm7, %v1395_v56, %v1144_v50  ;;  %v1389_v36 = vsel %vm1385_vm6, %v1372_v25, %v2739_v28 }
  0xb2   : > { %v1136_v15 = vpop.permute.xlu0 %1135  ;;  %v1146_v29 = vpop.permute.xlu1 %1145 }
  0xb3   : > { %v1404_v55 = vsel %vm1402_vm7, %v1387_v1, %v1136_v15 }
  0xb6   : > { %v2741_v31 = vpop.permute.xlu0 %1137  ;;  %v1184_v32 = vpop.permute.xlu1 %1183 }
  0xb7   : > { %v1429_v12 = vsel %vm1419_vm8, %v1412_v60, %v1184_v32  ;;  %v1406_v41 = vsel %vm1402_vm7, %v1389_v36, %v2741_v31 }
  0xba   : > { %v1176_v33 = vpop.permute.xlu0 %1175  ;;  %v1186_v22 = vpop.permute.xlu1 %1185 }
  0xbb   : > { %v1421_v17 = vsel %vm1419_vm8, %v1404_v55, %v1176_v33 }
  0xbe   : > { %v2743_v23 = vpop.permute.xlu0 %1177  ;;  %v1240_v21 = vpop.permute.xlu1 %1239 }
  0xbf   : > { %v1446_v38 = vsel %vm1436_vm9, %v1429_v12, %v1240_v21  ;;  %v1414_v21 = vsel %vm1402_vm7, %v1397_v19, %v1146_v29 }
  0xc0   : > { %v1431_v33 = vsel %vm1419_vm8, %v1414_v21, %v1186_v22  ;;  %v1423_v22 = vsel %vm1419_vm8, %v1406_v41, %v2743_v23 }
  0xc2   : > { %v1232_v39 = vpop.permute.xlu0 %1231  ;;  %v1242_v40 = vpop.permute.xlu1 %1241 }
  0xc3   : > { %v1438_v14 = vsel %vm1436_vm9, %v1421_v17, %v1232_v39  ;;  %v1448_v27 = vsel %vm1436_vm9, %v1431_v33, %v1242_v40 }
  0xc6   : > { %v1234_v51 = vpop.permute.xlu0 %1233  ;;  %v1296_v49 = vpop.permute.xlu1 %1295 }
  0xc7   : > { %v1463_v3 = vsel %vm1453_vm10, %v1446_v38, %v1296_v49  ;;  %v1440_v26 = vsel %vm1436_vm9, %v1423_v22, %v1234_v51 }
  0xca   : > { %v1288_v57 = vpop.permute.xlu0 %1287  ;;  %v1298_v58 = vpop.permute.xlu1 %1297 }
  0xcb   : > { %v1455_v50 = vsel %vm1453_vm10, %v1438_v14, %v1288_v57  ;;  %v1465_v37 = vsel %vm1453_vm10, %v1448_v27, %v1298_v58 }
  0xce   : > { %v1290_v44 = vpop.permute.xlu0 %1289  ;;  %v1336_v6 = vpop.permute.xlu1 %1335 }
  0xcf   : > { %v1480_v10 = vsel %vm1470_vm11, %v1463_v3, %v1336_v6  ;;  %v1457_v40 = vsel %vm1453_vm10, %v1440_v26, %v1290_v44 }
  0xd0   : > { %1965 = vmatprep.mubr.msk.bf16.mxu1 %vm1514_vm12, %v1480_v10 }
  0xd2   : > { %v1328_v15 = vpop.permute.xlu0 %1327  ;;  %v996_v32 = vpop.permute.xlu1 %995 }
  0xd3   : > { %v1472_v35 = vsel %vm1470_vm11, %v1455_v50, %v1328_v15  ;;  %v1364_v10 = vsel %vm1343_vm5, %v1856_v62, %v996_v32 }
  0xd4   : > { %1957 = vmatprep.mubr.msk.bf16.mxu0 %vm1514_vm12, %v1472_v35 }
  0xd6   : > { %v988_v29 = vpop.permute.xlu0 %987  ;;  %v1338_v39 = vpop.permute.xlu1 %1337 }
  0xd7   : > { %v1482_v24 = vsel %vm1470_vm11, %v1465_v37, %v1338_v39  ;;  %v1352_v2 = vsel %vm1343_vm5, %v1852_v30, %v988_v29 }
  0xd8   : > { %1966 = vmatmul.mubr.msk.bf16.vlgmr.msra.gmra.mrb[0].mxu1 %vm1514_vm12, %v1482_v24 }
  0xda   : > { %v1330_v42 = vpop.permute.xlu0 %1329  ;;  %v998_v28 = vpop.permute.xlu1 %997 }
  0xdb   : > { %v1474_v46 = vsel %vm1470_vm11, %v1457_v40, %v1330_v42  ;;  %v1367_v47 = vsel %vm1343_vm5, %v1857_v0, %v998_v28  ;;  %v1922_v42 = vld [vmem:[%s2928_s2] ss:$0 sm:$0xff] }
  0xdc   : > { %1958 = vmatmul.mubr.msk.bf16.vlgmr.msra.gmra.mrb[0].mxu0 %vm1514_vm12, %v1474_v46 }
  0xde   : > { %v990_v20 = vpop.permute.xlu0 %989  ;;  %v1036_v49 = vpop.permute.xlu1 %1035 }
  0xdf   : > { %v1382_v63 = vsel %vm1368_vm4, %v1364_v10, %v1036_v49  ;;  %v1355_v32 = vsel %vm1343_vm5, %v1853_v5, %v990_v20 }
  0xe2   : > { %v1028_v31 = vpop.permute.xlu0 %1027  ;;  %v1038_v52 = vpop.permute.xlu1 %1037 }
  0xe3   : > { %v1374_v62 = vsel %vm1368_vm4, %v1352_v2, %v1028_v31  ;;  %v1384_v14 = vsel %vm1368_vm4, %v1367_v47, %v1038_v52 }
  0xe6   : > { %v1030_v54 = vpop.permute.xlu0 %1029  ;;  %v1092_v56 = vpop.permute.xlu1 %1091 }
  0xe7   : > { %v1399_v9 = vsel %vm1385_vm6, %v1382_v63, %v1092_v56  ;;  %v1376_v48 = vsel %vm1368_vm4, %v1355_v32, %v1030_v54 }
  0xea   : > { %v1084_v57 = vpop.permute.xlu0 %1083  ;;  %v1094_v23 = vpop.permute.xlu1 %1093 }
  0xeb   : > { %v1391_v50 = vsel %vm1385_vm6, %v1374_v62, %v1084_v57  ;;  %v1401_v15 = vsel %vm1385_vm6, %v1384_v14, %v1094_v23 }
  0xee   : > { %v1086_v58 = vpop.permute.xlu0 %1085  ;;  %v1148_v59 = vpop.permute.xlu1 %1147 }
  0xef   : > { %v1416_v17 = vsel %vm1402_vm7, %v1399_v9, %v1148_v59  ;;  %v1393_v27 = vsel %vm1385_vm6, %v1376_v48, %v1086_v58 }
  0xf2   : > { %v1140_v60 = vpop.permute.xlu0 %1139  ;;  %v1150_v51 = vpop.permute.xlu1 %1149 }
  0xf3   : > { %v1408_v8 = vsel %vm1402_vm7, %v1391_v50, %v1140_v60  ;;  %v1418_v16 = vsel %vm1402_vm7, %v1401_v15, %v1150_v51 }
  0xf6   : > { %v1142_v61 = vpop.permute.xlu0 %1141  ;;  %v1188_v18 = vpop.permute.xlu1 %1187 }
  0xf7   : > { %v1433_v53 = vsel %vm1419_vm8, %v1416_v17, %v1188_v18  ;;  %v1410_v37 = vsel %vm1402_vm7, %v1393_v27, %v1142_v61 }
  0xfa   : > { %v1180_v45 = vpop.permute.xlu0 %1179  ;;  %v1190_v12 = vpop.permute.xlu1 %1189 }
  0xfb   : > { %v1425_v21 = vsel %vm1419_vm8, %v1408_v8, %v1180_v45  ;;  %v1435_v35 = vsel %vm1419_vm8, %v1418_v16, %v1190_v12 }
  0xfe   : > { %v1182_v38 = vpop.permute.xlu0 %1181  ;;  %v1244_v1 = vpop.permute.xlu1 %1243 }
  0xff   : > { %v1450_v19 = vsel %vm1436_vm9, %v1433_v53, %v1244_v1  ;;  %v1427_v41 = vsel %vm1419_vm8, %v1410_v37, %v1182_v38 }
 0x102   : > { %v1236_v3 = vpop.permute.xlu0 %1235  ;;  %v1246_v44 = vpop.permute.xlu1 %1245 }
 0x103   : > { %v1442_v33 = vsel %vm1436_vm9, %v1425_v21, %v1236_v3  ;;  %v1452_v25 = vsel %vm1436_vm9, %v1435_v35, %v1246_v44 }
 0x106   : > { %v1238_v6 = vpop.permute.xlu0 %1237  ;;  %v1300_v55 = vpop.permute.xlu1 %1299 }
 0x107   : > { %v1467_v4 = vsel %vm1453_vm10, %v1450_v19, %v1300_v55  ;;  %v1444_v24 = vsel %vm1436_vm9, %v1427_v41, %v1238_v6 }
 0x10a   : > { %v1292_v11 = vpop.permute.xlu0 %1291  ;;  %v1302_v13 = vpop.permute.xlu1 %1301 }
 0x10b   : > { %v1459_v36 = vsel %vm1453_vm10, %v1442_v33, %v1292_v11  ;;  %v1469_v34 = vsel %vm1453_vm10, %v1452_v25, %v1302_v13 }
 0x10e   : > { %v1294_v7 = vpop.permute.xlu0 %1293  ;;  %v1340_v30 = vpop.permute.xlu1 %1339 }
 0x10f   : > { %v1484_v0 = vsel %vm1470_vm11, %v1467_v4, %v1340_v30  ;;  %v1461_v22 = vsel %vm1453_vm10, %v1444_v24, %v1294_v7 }
 0x110   : > { %1969 = vmatprep.mubr.msk.bf16.mxu1 %vm1514_vm12, %v1484_v0 }
 0x112   : > { %v1332_v43 = vpop.permute.xlu0 %1331  ;;  %v1342_v5 = vpop.permute.xlu1 %1341 }
 0x113   : > { %v1476_v29 = vsel %vm1470_vm11, %v1459_v36, %v1332_v43  ;;  %v1486_v39 = vsel %vm1470_vm11, %v1469_v34, %v1342_v5 }
 0x114   : > { %1961 = vmatprep.mubr.msk.bf16.mxu0 %vm1514_vm12, %v1476_v29  ;;  %1970 = vmatmul.mubr.msk.bf16.gmra.mrb[4].mxu1 %vm1514_vm12, %v1486_v39 }
 0x116   : > { %v1334_v26 = vpop.permute.xlu0 %1333 }
 0x117   : > { %v1478_v40 = vsel %vm1470_vm11, %v1461_v22, %v1334_v26 }
 0x118   : > { %1962 = vmatmul.mubr.msk.bf16.gmra.mrb[4].mxu0 %vm1514_vm12, %v1478_v40 }
 0x1ab   : > { %v1967_v28 = vpop.f32.mrb[0].mxu1 }
 0x1ac   : > { %v1610_v46 = vadd.f32 %v1967_v28, %v1922_v42  ;;  %v1601_v20 = vpop.f32.mrb[1].mxu1 }
 0x1ad   : > { %v1602_v49 = vadd.f32 %v1922_v42, %v1601_v20  ;;  %v1968_v31 = vpop.f32.mrb[2].mxu1 }
 0x1ae   : > { %1642 = vst [vmem:[%s2850_s5 + $0x50] sm:$0xff] %v1610_v46  ;;  %v1613_v52 = vadd.f32 %v1968_v31, %v1922_v42  ;;  %v1604_v54 = vpop.f32.mrb[3].mxu1 }
 0x1af   : > { %v1959_v56 = vpop.f32.mrb[0].mxu0  ;;  %1640 = vst [vmem:[%s2850_s5 + $0x40] sm:$0xff] %v1602_v49  ;;  %v1605_v57 = vadd.f32 %v1922_v42, %v1604_v54 }
 0x1b0   : > { %v1578_v23 = vadd.f32 %v1959_v56, %v1922_v42  ;;  %v1569_v58 = vpop.f32.mrb[1].mxu0  ;;  %1643 = vst [vmem:[%s2850_s5 + $0x58] sm:$0xff] %v1613_v52 }
 0x1b1   : > { %v1570_v59 = vadd.f32 %v1922_v42, %v1569_v58  ;;  %v1960_v60 = vpop.f32.mrb[2].mxu0  ;;  %1641 = vst [vmem:[%s2850_s5 + $0x48] sm:$0xff] %v1605_v57 }
 0x1b2   : > { %1634 = vst [vmem:[%s2850_s5 + $0x10] sm:$0xff] %v1578_v23  ;;  %v1581_v51 = vadd.f32 %v1960_v60, %v1922_v42  ;;  %v1572_v61 = vpop.f32.mrb[3].mxu0 }
 0x1b3   : > { %1632 = vst [vmem:[%s2850_s5] sm:$0xff] %v1570_v59  ;;  %v1573_v18 = vadd.f32 %v1922_v42, %v1572_v61 }
 0x1b4   : > { %1635 = vst [vmem:[%s2850_s5 + $0x18] sm:$0xff] %v1581_v51 }
 0x1b5   : > { %1633 = vst [vmem:[%s2850_s5 + $0x8] sm:$0xff] %v1573_v18 }
 0x1e7   : > { %v1971_v45 = vpop.f32.mrb[4].mxu1 }
 0x1e8   : > { %v1626_v12 = vadd.f32 %v1971_v45, %v1922_v42  ;;  %v1617_v38 = vpop.f32.mrb[5].mxu1 }
 0x1e9   : > { %v1618_v1 = vadd.f32 %v1922_v42, %v1617_v38  ;;  %v1972_v3 = vpop.f32.mrb[6].mxu1 }
 0x1ea   : > { %1646 = vst [vmem:[%s2850_s5 + $0x70] sm:$0xff] %v1626_v12  ;;  %v1629_v44 = vadd.f32 %v1972_v3, %v1922_v42  ;;  %v1620_v6 = vpop.f32.mrb[7].mxu1 }
 0x1eb   : > { %v1963_v55 = vpop.f32.mrb[4].mxu0  ;;  %1644 = vst [vmem:[%s2850_s5 + $0x60] sm:$0xff] %v1618_v1  ;;  %v1621_v10 = vadd.f32 %v1922_v42, %v1620_v6 }
 0x1ec   : > { %v1594_v63 = vadd.f32 %v1963_v55, %v1922_v42  ;;  %v1585_v9 = vpop.f32.mrb[5].mxu0  ;;  %1647 = vst [vmem:[%s2850_s5 + $0x78] sm:$0xff] %v1629_v44 }
 0x1ed   : > { %v1586_v11 = vadd.f32 %v1922_v42, %v1585_v9  ;;  %v1964_v13 = vpop.f32.mrb[6].mxu0  ;;  %1645 = vst [vmem:[%s2850_s5 + $0x68] sm:$0xff] %v1621_v10 }
 0x1ee   : > { %1638 = vst [vmem:[%s2850_s5 + $0x30] sm:$0xff] %v1594_v63  ;;  %v1597_v17 = vadd.f32 %v1964_v13, %v1922_v42  ;;  %v1588_v2 = vpop.f32.mrb[7].mxu0 }
 0x1ef   : > { %1636 = vst [vmem:[%s2850_s5 + $0x20] sm:$0xff] %v1586_v11  ;;  %v1589_v47 = vadd.f32 %v1922_v42, %v1588_v2 }
 0x1f0   : > { %1639 = vst [vmem:[%s2850_s5 + $0x38] sm:$0xff] %v1597_v17 }
 0x1f1   : > { %1637 = vst [vmem:[%s2850_s5 + $0x28] sm:$0xff] %v1589_v47 }
 0x1f2   : > { %2118 = shalt.err (!%p2115_p5)
}
 0x1f3   : > { %s2119_s26 = scalar_lea.hbm %s2870_s11, 2048  ;;  %s2123_s29 = scalar_lea.hbm %s2929_s3, 4096 }
 0x1f4   : > { %p2120_p6 = scmp.ne.s32.totalorder %s2870_s11, %s2119_s26  ;;  %p2124_p10 = scmp.lt.u32.totalorder %s2870_s11, %s2929_s3 }
 0x1f5   : > { %p2125_p11 = scmp.lt.u32.totalorder %s2123_s29, %s2119_s26  ;;  %p2127_p13 = scmp.lt.u32.totalorder %s2119_s26, %s2870_s11 }
 0x1f6   : > { %p2121_p7 = pnand %p2120_p6, %p2255_p4 }
 0x1f7   : > { %p2126_p12 = por %p2125_p11, %p2124_p10 }
 0x1f8   : > { %p2122_p9 = pneg %p2121_p7 }
 0x1f9   : > { %p2128_p0 = por %p2127_p13, %p2126_p12 }
 0x1fb   : > { %p2129_p1 = pnand %p2128_p0, %p2122_p9 }
 0x1fd   : > { %2132 = shalt.err (!%p2129_p1)
}
 0x1fe   : > { %s2194_s5 = smov 128  }
 0x1ff   : > { %1982 = dma.vmem_to_hbm [thread:$0]  (%p2255_p4), %s2873_s8, 2048, %s2870_s11, %s2879_s15, %s2194_s5, %s2194_s5, %s2187_s6  }
 0x200 PF: > { %p1988_p2 = scmp.ge.s32.totalorder %s2183_s17, 2  ;;  %s1680_s7 = sand.u32 1, %s2163_s12  }
 0x201   : > { %s1681_s9 = scalar_lea.sflag [#allocation3], %s1680_s7 }
 0x202   : > { %p1985_p3 = pnand %p1988_p2, %p2262_p8 }
 0x204   : > { %2158 = dma.done.wait (!%p1985_p3), %s1681_s9, 2048  }
 0x205   : > { %2160 = vsyncadd (!%p1985_p3), %s1681_s9, 4294965248  ;;  %s16_s17 = sadd.s32 1, %s2183_s17   ;;  %s2934_s12 = smov %s2167_s13 }
 0x206   : > { %p13_p5 = scmp.ge.s32.totalorder %s16_s17, 4   ;;  %s2935_s13 = smov %s2171_s14 }
 0x207   : > { %s2936_s14 = smov %s2268_s25  ;;  %s2937_s15 = smov %s2179_s16 }
 0x208   : > { %s2938_s16 = smov %s2940_s20  ;;  %15 = sbr.rel (!%p13_p5) target bundleno = 4 (0x4), region = 72 }
 0x20f   :  { %1686 = vsyncpa [#allocation3], 1 }
 0x210   :  { %1688 = vsyncpa [#allocation3 + $0x1], 1 }

// kernel: tpu_custom_call.1
= control target key start
LH: loop header
LB: loop body
LE: loop exit
PB: predicated region body
PF: predicated region fallthrough
CT: control target
= control target key end

     0   :  { %8 = vsyncpa [#allocation3], 0  ;;  %s4320_s0 = inlined_call_operand.vmem [shape: bf16[2,1,4,9,17,4], index: 0, kind: input, shape index: {}]   ;;  %s4321_s1 = inlined_call_operand.vmem [shape: bf16[36,128], index: 1, kind: input, shape index: {}]   ;;  %s4322_s2 = inlined_call_operand.vmem [shape: f32[1,128], index: 2, kind: input, shape index: {}]   ;;  %s4323_s3 = inlined_call_operand.hbm [shape: f32[2,8,16,128], index: 3, kind: output, shape index: {}]  }
   0x1   :  { %10 = vsyncpa [#allocation3 + $0x1], 0  ;;  %s3462_s12 = smov 0   ;;  %s3464_s13 = smov 0  }
   0x2   :  { %s3466_s14 = smov 0   ;;  %s3468_s15 = smov 0  }
   0x3   :  { %s3470_s16 = smov 0   ;;  %s3472_s17 = smov 0  }
   0x4 LB: > { %s2608_s18 = sadd.s32 4294967295, %s3437_s17   ;;  %s2609_s19 = sadd.s32 4294967294, %s3437_s17   ;;  %s3437_s17 = sphi %s3472_s17, %s16_s17   ;;  %s3433_s16 = sphi %s3470_s16, %s4363_s16   ;;  %s3429_s15 = sphi %s3468_s15, %s4362_s15   ;;  %s3425_s14 = sphi %s3466_s14, %s4361_s14   ;;  %s3421_s13 = sphi %s3464_s13, %s4360_s13   ;;  %s3417_s12 = sphi %s3462_s12, %s4359_s12  }
   0x5   : > { %s28_s20 = sadd.s32 1, %s3433_s16  ;;  %s107_s21 = sadd.s32 1, %s3425_s14 }
   0x6   : > { %p30_p0 = scmp.ge.s32.totalorder %s28_s20, 2  ;;  %p117_p1 = scmp.ne.s32.totalorder %s3425_s14, %s3421_s13 }
   0x7   : > { %p118_p2 = scmp.eq.s32.totalorder %s2608_s18, 1  ;;  %p123_p3 = scmp.ne.s32.totalorder %s3421_s13, %s3417_s12 }
   0x8   : > { %s4365_s20 = smov (%p30_p0, %s28_s20), 0  ;;  %p124_p5 = scmp.eq.s32.totalorder %s2609_s19, 1 }
   0x9   : > { %p3502_p4 = por %p118_p2, %p117_p1  ;;  %s102_s23 = ssub.s32 %s3433_s16, %s4365_s20 }
   0xa   : > { %p2612_p6 = scmp.ge.s32.totalorder %s3437_s17, 1  ;;  %p105_p7 = scmp.eq.s32.totalorder %s102_s23, 0 }
   0xb   : > { %p3509_p8 = por %p124_p5, %p123_p3  ;;  %p160_p9 = scmp.lt.s32.totalorder %s3437_s17, 3 }
   0xc   : > { %s3515_s25 = scalar_select %p105_p7, %s3425_s14, %s107_s21  }
   0xd   : > { %p161_p10 = pnand %p2612_p6, %p160_p9 }
   0xf   : > { %164 = sbr.rel (%p161_p10) target bundleno = 405 (0x195), region = 32 }
  0x16   : > { %v3307_v0 = vld [vmem:[%s4321_s1] ss:$0 sps:$4 sm:$0xcc]   ;;  %vm974_vm0 = vcmask 1041408   ;;  %v3523_v1 = vld [vmem:[%s4321_s1 + $0x8] sm:$0x3] }
  0x17   : > { %p188_p11 = scmp.lt.s32.totalorder %s3429_s15, 1  ;;  %v948_v2 = vrot.slane %v3307_v0, 2  ;;  %3243 = vmatprep.subr.msk.bf16.mxu0 %vm974_vm0, %v3523_v1  ;;  %v3530_v3 = vsel %vm974_vm0, %v3523_v1, 0  ;;  %v903_v4 = vld [vmem:[%s4321_s1] sm:$0x3]  ;;  %vm949_vm1 = vcmask 31744  }
  0x18   : > { %4337 = vst [vmem:[#allocation5_spill] sm:$0xff] %v3530_v3  ;;  %3020 = vmatpush3.bf16.msra.mxu0 %v3530_v3  ;;  %v3310_v5 = vld [vmem:[%s4321_s1 + $0x8] ss:$0 sps:$4 sm:$0xcc]   ;;  %v1140_v11 = vsel %vm974_vm0, %v903_v4, 0  ;;  %s185_s5 = sand.u32 1, %s3421_s13  }
  0x19   : > { %s189_s30 = scalar_select %p188_p11, %s3429_s15, 1  ;;  %3239 = vmatprep.subr.msk.bf16.mxu1 %vm974_vm0, %v948_v2  ;;  %v976_v6 = vsel %vm974_vm0, %v948_v2, 0  ;;  %v1798_v7 = vrot.slane %v3310_v5, 2  ;;  %v1939_v12 = vld [vmem:[%s4321_s1 + $0xc] sm:$0x3] }
  0x1a   : > { %2948 = vmatpush3.bf16.msra.mxu1 %v976_v6  ;;  %v3563_v15 = vld [vmem:[%s4321_s1 + $0x4] sm:$0x3]  ;;  %vm240_vm2 = vsmask.f32 3328  ;;  %vm241_vm3 = vsmask.f32 7440 }
  0x1b   : > { %s3249_s8 = smul.u32 432, %s189_s30  ;;  %3240 = vmatprep.subr.msk.bf16.mxu1 %vm974_vm0, %v903_v4  ;;  %3245 = vmatprep.subr.msk.bf16.mxu0 %vm974_vm0, %v1798_v7  ;;  %v1824_v14 = vsel %vm974_vm0, %v1798_v7, 0  ;;  %v3572_v18 = vld [vmem:[%s4321_s1 + $0xc] ss:$0 sps:$4 sm:$0xcc]   ;;  %v3581_v22 = vsel %vm974_vm0, %v1939_v12, 0  ;;  %vm3615_vm4 = vmor %vm240_vm2, %vm241_vm3 }
  0x1c   : > { %v2164_v32 = vrot.slane %v3572_v18, 2  ;;  %s2613_s6 = sshll.u32 %s185_s5, 7  ;;  %v4227_v48 = vld [vmem:[%s4322_s2] ss:$0 sm:$0xff]  ;;  %s2865_s10 = sshll.u32 %s3429_s15, 11 }
  0x1d   : > { %s3546_s11 = scalar_lea.vmem %s4320_s0, %s3249_s8  ;;  %s4231_s9 = scalar_lea.vmem [#allocation2], %s2613_s6 }
  0x1e   : > { %v3308_v8 = vld [vmem:[%s3546_s11 + $0x6c] sm:$0xff]   ;;  %v3309_v9 = vld [vmem:[%s3546_s11 + $0x144] sm:$0xff]   ;;  %v3311_v10 = vld [vmem:[%s3546_s11 + $0x78] sm:$0xff]   ;;  %s4264_s21 = scalar_lea.hbm %s4323_s3, %s2865_s10  ;;  %s4274_s15 = scalar_lea.sflag [#allocation3], %s185_s5 }
  0x1f   : > { %2949 = vmatprep.mubr.msk.bf16.mxu1 %vm949_vm1, %v3308_v8  ;;  %3021 = vmatprep.mubr.msk.bf16.mxu0 %vm949_vm1, %v3309_v9  ;;  %v3312_v13 = vld [vmem:[%s3546_s11 + $0x150] sm:$0xff]   ;;  %v3313_v16 = vld [vmem:[%s3546_s11 + $0x84] sm:$0xff]   ;;  %v3314_v17 = vld [vmem:[%s3546_s11 + $0x15c] sm:$0xff]   ;;  %s3439_s26 = smov [#allocation2]  }
  0x20   : > { %2950 = vmatmul.mubr.msk.bf16.vlgmr.msra.gmra.mrb[0].mxu1 %vm949_vm1, %v3311_v10  ;;  %3022 = vmatmul.mubr.msk.bf16.vlgmr.msra.gmra.mrb[0].mxu0 %vm949_vm1, %v3312_v13  ;;  %v3315_v19 = vld [vmem:[%s3546_s11 + $0x90] sm:$0xff]   ;;  %v3316_v20 = vld [vmem:[%s3546_s11 + $0x168] sm:$0xff]   ;;  %v3317_v21 = vld [vmem:[%s3546_s11 + $0x9c] sm:$0xff]   ;;  %s3363_s27 = sshll.u32 %s3439_s26, 4  ;;  %s3364_s27 = int_to_ptr.vmem [resolvable:$false] %s3363_s27 }
  0x21   : > { %2966 = vmatpush3.bf16.msra.mxu1 %v1140_v11  ;;  %3038 = vmatpush3.bf16.msra.mxu0 %v1824_v14  ;;  %v3586_v23 = vld [vmem:[%s3546_s11 + $0xd8] sm:$0xf]  ;;  %v3589_v24 = vld [vmem:[%s3546_s11 + $0xdc] sm:$0xf]  ;;  %v2663_v25 = vld [vmem:[%s3546_s11 + $0xe0] sm:$0x1] }
  0x22   : > { %2953 = vmatprep.mubr.msk.bf16.mxu1 %vm949_vm1, %v3313_v16  ;;  %3025 = vmatprep.mubr.msk.bf16.mxu0 %vm949_vm1, %v3314_v17  ;;  %v478_v26 = vshrl.u32 %v3586_v23, 16  ;;  %v481_v27 = vshll.u32 %v3586_v23, 16  ;;  %v487_v28 = vshll.u32 %v3589_v24, 16  ;;  %v491_v29 = vshrl.u32 %v3589_v24, 16  ;;  %v3597_v31 = vld [vmem:[%s3546_s11 + $0xe4] sm:$0xf] }
  0x23   : > { %3246 = vmatprep.subr.msk.bf16.mxu0 %vm974_vm0, %v1939_v12  ;;  %3241 = vmatprep.subr.msk.bf16.mxu1 %vm974_vm0, %v3563_v15  ;;  %v497_v30 = vshll.u32 %v2663_v25, 16  ;;  %v3604_v38 = vld [vmem:[%s3546_s11 + $0xe8] sm:$0xf]  ;;  %v2664_v40 = vld [vmem:[%s3546_s11 + $0xec] sm:$0x1]  ;;  %v502_v41 = vshrl.u32 %v3597_v31, 16 }
  0x24   : > { %v480_v34 = vrot.slane %v478_v26, 4  ;;  %v483_v35 = vrot.slane %v481_v27, 5  ;;  %v489_v36 = vrot.slane %v487_v28, 5  ;;  %v493_v37 = vrot.slane %v491_v29, 4  ;;  %v3318_v49 = vld [vmem:[%s3546_s11 + $0xa8] sm:$0xff]   ;;  %v3319_v61 = vld [vmem:[%s3546_s11 + $0xb4] sm:$0xff]  }
  0x25   : > { %v499_v39 = vrot.slane %v497_v30, 5  ;;  %v505_v42 = vshll.u32 %v3597_v31, 16  ;;  %v511_v43 = vshll.u32 %v3604_v38, 16  ;;  %v515_v46 = vshrl.u32 %v3604_v38, 16  ;;  %v3621_v53 = vld [vmem:[%s3546_s11 + $0xf0] sm:$0xf] }
  0x26   : > { %v484_v44 = vor.u32 %v483_v35, %v480_v34  ;;  %v494_v45 = vor.u32 %v493_v37, %v489_v36  ;;  %v521_v47 = vshll.u32 %v2664_v40, 16  ;;  %v504_v50 = vrot.slane %v502_v41, 4  ;;  %v3626_v59 = vld [vmem:[%s3546_s11 + $0xf4] sm:$0xf]  ;;  %v2665_v62 = vld [vmem:[%s3546_s11 + $0xf8] sm:$0x1] }
  0x27   : > { %v507_v51 = vrot.slane %v505_v42, 5  ;;  %v513_v52 = vrot.slane %v511_v43, 5  ;;  %v517_v57 = vrot.slane %v515_v46, 4  ;;  %v526_v63 = vshrl.u32 %v3621_v53, 16  ;;  %v3639_v12 = vld [vmem:[%s3546_s11 + $0xfc] sm:$0xf] }
  0x28   : > { %2954 = vmatmul.mubr.msk.bf16.gmra.mrb[4].mxu1 %vm949_vm1, %v3315_v19  ;;  %3026 = vmatmul.mubr.msk.bf16.gmra.mrb[4].mxu0 %vm949_vm1, %v3316_v20  ;;  %v485_v55 = vrot.slane %v484_v44, 4  ;;  %v495_v56 = vrot.slane %v494_v45, 4  ;;  %v523_v58 = vrot.slane %v521_v47, 5  ;;  %v529_v0 = vshll.u32 %v3621_v53, 16  ;;  %4340 = vst [vmem:[#allocation6_spill] sm:$0xff] %v3639_v12  ;;  %v3320_v41 = vld [vmem:[%s3546_s11 + $0xc0] sm:$0xff]  }
  0x29   : > { %2957 = vmatprep.mubr.msk.bf16.mxu1 %vm949_vm1, %v3317_v21  ;;  %v508_v60 = vor.u32 %v507_v51, %v504_v50  ;;  %v535_v2 = vshll.u32 %v3626_v59, 16  ;;  %v518_v6 = vor.u32 %v517_v57, %v513_v52  ;;  %v539_v7 = vshrl.u32 %v3626_v59, 16  ;;  %v3643_v19 = vld [vmem:[%s3546_s11 + $0x100] sm:$0xf]  ;;  %v2666_v25 = vld [vmem:[%s3546_s11 + $0x104] sm:$0x1] }
  0x2a   : > { %v490_v4 = vsel %vm3615_vm4, %v485_v55, %v489_v36  ;;  %v500_v5 = vsel %vm3615_vm4, %v495_v56, %v499_v39  ;;  %v528_v10 = vrot.slane %v526_v63, 4  ;;  %v531_v11 = vrot.slane %v529_v0, 5  ;;  %4341 = vst [vmem:[#allocation7_spill] sm:$0xff] %v3643_v19  ;;  %v3661_v47 = vld [vmem:[%s3546_s11] sm:$0xf]  ;;  %s3365_s28 = scalar_lea.vmem %s3364_s27, 4096 }
  0x2b   : > { %v2793_v8 = vcombine.low %v490_v4, %v500_v5  ;;  %v509_v9 = vrot.slane %v508_v60, 4  ;;  %v519_v13 = vrot.slane %v518_v6, 4  ;;  %v537_v14 = vrot.slane %v535_v2, 5  ;;  %v3673_v55 = vld [vmem:[%s3546_s11 + $0x10c] sm:$0xf] }
  0x2c   : > { %v541_v16 = vrot.slane %v539_v7, 4  ;;  %v545_v17 = vshll.u32 %v2665_v62, 16  ;;  %v532_v21 = vor.u32 %v531_v11, %v528_v10  ;;  %v550_v26 = vshrl.u32 %v3639_v12, 16  ;;  %4343 = vst [vmem:[#allocation9_spill] sm:$0xff] %v3673_v55  ;;  %v3907_v33 = vld [vmem:[%s3546_s11 + $0x3c] sm:$0xf] }
  0x2d   : > { %3039 = vmatprep.mubr.msk.bf16.mxu0 %vm949_vm1, %v2793_v8  ;;  %v514_v20 = vsel %vm3615_vm4, %v509_v9, %v513_v52  ;;  %v553_v27 = vshll.u32 %v3639_v12, 16  ;;  %v524_v28 = vsel %vm3615_vm4, %v519_v13, %v523_v58  ;;  %v559_v34 = vshll.u32 %v3643_v19, 16  ;;  %v3670_v52 = vld [vmem:[%s3546_s11 + $0x108] sm:$0xf]  ;;  %v2667_v58 = vld [vmem:[%s3546_s11 + $0x110] sm:$0x1] }
  0x2e   : > { %v542_v29 = vor.u32 %v541_v16, %v537_v14  ;;  %v547_v30 = vrot.slane %v545_v17, 5  ;;  %v2794_v35 = vcombine.low %v514_v20, %v524_v28  ;;  %v533_v36 = vrot.slane %v532_v21, 4  ;;  %4342 = vst [vmem:[#allocation8_spill] sm:$0xff] %v3670_v52  ;;  %v3689_v2 = vld [vmem:[%s4321_s1 + $0x4] ss:$0 sps:$4 sm:$0xcc]  }
  0x2f   : > { %v552_v37 = vrot.slane %v550_v26, 4  ;;  %v555_v39 = vrot.slane %v553_v27, 5  ;;  %v561_v42 = vrot.slane %v559_v34, 5  ;;  %v563_v43 = vshrl.u32 %v3643_v19, 16  ;;  %v3696_v8 = vld [vmem:[%s3546_s11 + $0xc] sm:$0xf] }
  0x30   : > { %2958 = vmatmul.mubr.msk.bf16.gmra.mrb[8].mxu1 %vm949_vm1, %v3318_v49  ;;  %v543_v40 = vrot.slane %v542_v29, 4  ;;  %v569_v44 = vshll.u32 %v2666_v25, 16  ;;  %3040 = vmatmul.mubr.msk.bf16.vlgmr.msra.gmra.mrb[0].mxu0 %vm949_vm1, %v2794_v35  ;;  %v538_v45 = vsel %vm3615_vm4, %v533_v36, %v537_v14  ;;  %v3664_v49 = vld [vmem:[%s3546_s11 + $0x4] sm:$0xf]  ;;  %v574_v62 = vshrl.u32 %v3670_v52, 16 }
  0x31   : > { %2961 = vmatprep.mubr.msk.bf16.mxu1 %vm949_vm1, %v3319_v61  ;;  %v556_v46 = vor.u32 %v555_v39, %v552_v37  ;;  %3056 = vmatpush3.bf16.msra.mxu0 %v3581_v22  ;;  %v565_v51 = vrot.slane %v563_v43, 4  ;;  %v2728_v61 = vcombine.low %v3661_v47, %v3664_v49  ;;  %v577_v63 = vshll.u32 %v3670_v52, 16  ;;  %v3699_v13 = vld [vmem:[%s3546_s11 + $0x10] sm:$0xf]  ;;  %v3704_v17 = vld [vmem:[%s3546_s11 + $0x114] sm:$0xf] }
  0x32   : > { %v548_v50 = vsel %vm3615_vm4, %v543_v40, %v547_v30  ;;  %3247 = vmatprep.subr.msk.bf16.mxu0 %vm974_vm0, %v2164_v32  ;;  %v571_v22 = vrot.slane %v569_v44, 5  ;;  %v583_v0 = vshll.u32 %v3673_v55, 16  ;;  %v587_v6 = vshrl.u32 %v3673_v55, 16  ;;  %4344 = vst [vmem:[#allocation10_spill] sm:$0xff] %v3704_v17  ;;  %v3709_v26 = vld [vmem:[%s3546_s11 + $0x118] sm:$0xf] }
  0x33   : > { %v2795_v56 = vcombine.low %v538_v45, %v548_v50  ;;  %v557_v57 = vrot.slane %v556_v46, 4  ;;  %v566_v60 = vor.u32 %v565_v51, %v561_v42  ;;  %v593_v7 = vshll.u32 %v2667_v58, 16  ;;  %4345 = vst [vmem:[#allocation11_spill] sm:$0xff] %v3709_v26  ;;  %v2668_v30 = vld [vmem:[%s3546_s11 + $0x11c] sm:$0x1] }
  0x34   : > { %v576_v9 = vrot.slane %v574_v62, 4  ;;  %v579_v10 = vrot.slane %v577_v63, 5  ;;  %v585_v11 = vrot.slane %v583_v0, 5  ;;  %v589_v16 = vrot.slane %v587_v6, 4  ;;  %v3724_v45 = vld [vmem:[%s3546_s11 + $0x18] sm:$0xf] }
  0x35   : > { %3043 = vmatprep.mubr.msk.bf16.mxu0 %vm949_vm1, %v2795_v56  ;;  %v562_v4 = vsel %vm3615_vm4, %v557_v57, %v561_v42  ;;  %v567_v5 = vrot.slane %v566_v60, 4  ;;  %v1289_v25 = vsel %vm974_vm0, %v3563_v15, 0  ;;  %v595_v28 = vrot.slane %v593_v7, 5  ;;  %v3729_v56 = vld [vmem:[%s3546_s11 + $0x1c] sm:$0xf] }
  0x36   : > { %v580_v21 = vor.u32 %v579_v10, %v576_v9  ;;  %v590_v27 = vor.u32 %v589_v16, %v585_v11  ;;  %v2729_v29 = vcombine.low %v3696_v8, %v3699_v13  ;;  %v1448_v34 = vrot.slane %v3689_v2, 2  ;;  %v3732_v57 = vld [vmem:[%s3546_s11 + $0x120] sm:$0xf]  ;;  %v3738_v62 = vld [vmem:[%s3546_s11 + $0x124] sm:$0xf] }
  0x37   : > { %v572_v14 = vsel %vm3615_vm4, %v567_v5, %v571_v22  ;;  %v598_v36 = vshrl.u32 %v3704_v17, 16  ;;  %v601_v15 = vshll.u32 %v3704_v17, 16  ;;  %v607_v39 = vshll.u32 %v3709_v26, 16  ;;  %v3835_v2 = vld [vmem:[%s3546_s11 + $0x48] sm:$0xf] }
  0x38   : > { %2962 = vmatmul.mubr.msk.bf16.gmra.mrb[12].mxu1 %vm949_vm1, %v3320_v41  ;;  %v2796_v20 = vcombine.low %v562_v4, %v572_v14  ;;  %v581_v35 = vrot.slane %v580_v21, 4  ;;  %v591_v37 = vrot.slane %v590_v27, 4  ;;  %v611_v40 = vshrl.u32 %v3709_v26, 16  ;;  %v2669_v4 = vld [vmem:[%s3546_s11 + $0x128] sm:$0x1] }
  0x39   : > { %2967 = vmatprep.mubr.msk.bf16.mxu1 %vm949_vm1, %v2728_v61  ;;  %v600_v42 = vrot.slane %v598_v36, 4  ;;  %v603_v43 = vrot.slane %v601_v15, 5  ;;  %v617_v44 = vshll.u32 %v2668_v30, 16  ;;  %v609_v50 = vrot.slane %v607_v39, 5  ;;  %v3757_v27 = vld [vmem:[%s3546_s11 + $0x28] sm:$0xf] }
  0x3a   : > { %3044 = vmatmul.mubr.msk.bf16.gmra.mrb[4].mxu0 %vm949_vm1, %v2796_v20  ;;  %v586_v41 = vsel %vm3615_vm4, %v581_v35, %v585_v11  ;;  %v596_v46 = vsel %vm3615_vm4, %v591_v37, %v595_v28  ;;  %v613_v51 = vrot.slane %v611_v40, 4  ;;  %v2730_v0 = vcombine.low %v3724_v45, %v3729_v56  ;;  %v3760_v35 = vld [vmem:[%s3546_s11 + $0x12c] sm:$0xf]  ;;  %v3763_v15 = vld [vmem:[%s3546_s11 + $0x130] sm:$0xf] }
  0x3b   : > { %v2797_v58 = vcombine.low %v586_v41, %v596_v46  ;;  %v604_v60 = vor.u32 %v603_v43, %v600_v42  ;;  %v619_v61 = vrot.slane %v617_v44, 5  ;;  %v622_v5 = vshrl.u32 %v3732_v57, 16  ;;  %v2670_v41 = vld [vmem:[%s3546_s11 + $0x134] sm:$0x1] }
  0x3c   : > { %v614_v22 = vor.u32 %v613_v51, %v609_v50  ;;  %v625_v7 = vshll.u32 %v3732_v57, 16  ;;  %v631_v11 = vshll.u32 %v3738_v62, 16  ;;  %v635_v14 = vshrl.u32 %v3738_v62, 16 }
  0x3d   : > { %3047 = vmatprep.mubr.msk.bf16.mxu0 %vm949_vm1, %v2797_v58  ;;  %v605_v63 = vrot.slane %v604_v60, 4  ;;  %v624_v10 = vrot.slane %v622_v5, 4  ;;  %v641_v21 = vshll.u32 %v2669_v4, 16  ;;  %v646_v43 = vshrl.u32 %v3760_v35, 16  ;;  %v3779_v5 = vld [vmem:[%s3546_s11 + $0x30] sm:$0xf] }
  0x3e   : > { %v615_v6 = vrot.slane %v614_v22, 4  ;;  %v627_v20 = vrot.slane %v625_v7, 5  ;;  %v637_v30 = vrot.slane %v635_v14, 4  ;;  %v649_v44 = vshll.u32 %v3760_v35, 16 }
  0x3f   : > { %v610_v9 = vsel %vm3615_vm4, %v605_v63, %v609_v50  ;;  %v643_v39 = vrot.slane %v641_v21, 5  ;;  %v655_v50 = vshll.u32 %v3763_v15, 16  ;;  %v659_v51 = vshrl.u32 %v3763_v15, 16  ;;  %v3791_v21 = vld [vmem:[%s3546_s11 + $0x10] sm:$0xf] }
  0x40   : > { %2968 = vmatmul.mubr.msk.bf16.vlgmr.msra.gmra.mrb[0].mxu1 %vm949_vm1, %v2729_v29  ;;  %v620_v16 = vsel %vm3615_vm4, %v615_v6, %v619_v61  ;;  %v633_v29 = vrot.slane %v631_v11, 5  ;;  %v628_v36 = vor.u32 %v627_v20, %v624_v10  ;;  %v648_v60 = vrot.slane %v646_v43, 4  ;;  %v3782_v6 = vld [vmem:[%s3546_s11 + $0x34] sm:$0xf]  ;;  %v3788_v20 = vld [vmem:[%s3546_s11 + $0xc] sm:$0xf] }
  0x41   : > { %2984 = vmatpush3.bf16.msra.mxu1 %v1289_v25  ;;  %2971 = vmatprep.mubr.msk.bf16.mxu1 %vm949_vm1, %v2730_v0  ;;  %v3754_v25 = vld [vmem:[%s3546_s11 + $0x24] sm:$0xf]  ;;  %v2798_v28 = vcombine.low %v610_v9, %v620_v16  ;;  %v651_v22 = vrot.slane %v649_v44, 5  ;;  %v665_v61 = vshll.u32 %v2670_v41, 16  ;;  %v657_v0 = vrot.slane %v655_v50, 5 }
  0x42   : > { %3242 = vmatprep.subr.msk.bf16.mxu1 %vm974_vm0, %v1448_v34  ;;  %v638_v37 = vor.u32 %v637_v30, %v633_v29  ;;  %v2731_v40 = vcombine.low %v3754_v25, %v3757_v27  ;;  %v629_v42 = vrot.slane %v628_v36, 4  ;;  %v661_v4 = vrot.slane %v659_v51, 4  ;;  %v3804_v41 = vld [vmem:[%s3546_s11 + $0x40] sm:$0xf] }
  0x43   : > { %3048 = vmatmul.mubr.msk.bf16.gmra.mrb[8].mxu0 %vm949_vm1, %v2798_v28  ;;  %v652_v9 = vor.u32 %v651_v22, %v648_v60  ;;  %v667_v11 = vrot.slane %v665_v61, 5  ;;  %v2732_v16 = vcombine.low %v3779_v5, %v3782_v6  ;;  %v244_v28 = vshrl.u32 %v3661_v47, 16  ;;  %v3830_v61 = vld [vmem:[%s3546_s11 + $0x1c] sm:$0xf] }
  0x44   : > { %v639_v46 = vrot.slane %v638_v37, 4  ;;  %v634_v58 = vsel %vm3615_vm4, %v629_v42, %v633_v29  ;;  %v662_v10 = vor.u32 %v661_v4, %v657_v0  ;;  %v247_v29 = vshll.u32 %v3661_v47, 16 }
  0x45   : > { %v653_v14 = vrot.slane %v652_v9, 4  ;;  %v253_v36 = vshll.u32 %v3664_v49, 16  ;;  %v257_v37 = vshrl.u32 %v3664_v49, 16  ;;  %v2810_v47 = vcombine.low %v3788_v20, %v3791_v21 }
  0x46   : > { %v644_v63 = vsel %vm3615_vm4, %v639_v46, %v643_v39  ;;  %v663_v30 = vrot.slane %v662_v10, 4  ;;  %v2190_v49 = vsel %vm974_vm0, %v2164_v32, 0  ;;  %v268_v43 = vshrl.u32 %v3696_v8, 16 }
  0x47   : > { %v2799_v7 = vcombine.low %v634_v58, %v644_v63  ;;  %v658_v39 = vsel %vm3615_vm4, %v653_v14, %v657_v0  ;;  %v271_v44 = vshll.u32 %v3696_v8, 16  ;;  %v277_v46 = vshll.u32 %v3699_v13, 16  ;;  %v3827_v8 = vld [vmem:[%s3546_s11 + $0x18] sm:$0xf]  ;;  %v3853_v14 = vld [vmem:[%s3546_s11 + $0x28] sm:$0xf] }
  0x48   : > { %2972 = vmatmul.mubr.msk.bf16.gmra.mrb[4].mxu1 %vm949_vm1, %v2731_v40  ;;  %v3801_v40 = vld [vmem:[%s3546_s11 + $0x3c] sm:$0xf]  ;;  %v668_v42 = vsel %vm3615_vm4, %v663_v30, %v667_v11  ;;  %v246_v51 = vrot.slane %v244_v28, 4  ;;  %v249_v58 = vrot.slane %v247_v29, 5  ;;  %v3821_v18 = vsel %vm974_vm0, %v1448_v34, 0 }
  0x49   : > { %3051 = vmatprep.mubr.msk.bf16.mxu0 %vm949_vm1, %v2799_v7  ;;  %2975 = vmatprep.mubr.msk.bf16.mxu1 %vm949_vm1, %v2732_v16  ;;  %v2800_v50 = vcombine.low %v658_v39, %v668_v42  ;;  %v2733_v60 = vcombine.low %v3801_v40, %v3804_v41  ;;  %v3823_v32 = vrot.slane %v253_v36, 5  ;;  %v259_v22 = vrot.slane %v257_v37, 4  ;;  %v3838_v34 = vld [vmem:[%s3546_s11 + $0x4c] sm:$0xf]  ;;  %v3850_v11 = vld [vmem:[%s3546_s11 + $0x24] sm:$0xf] }
  0x4a   : > { %v3840_v63 = vrot.slane %v268_v43, 4  ;;  %v3842_v0 = vrot.slane %v271_v44, 5  ;;  %v3844_v4 = vrot.slane %v277_v46, 5  ;;  %v281_v7 = vshrl.u32 %v3699_v13, 16  ;;  %v3862_v13 = vld [vmem:[%s3546_s11 + $0x54] sm:$0xf] }
  0x4b   : > { %3052 = vmatmul.mubr.msk.bf16.gmra.mrb[12].mxu0 %vm949_vm1, %v2800_v50  ;;  %v292_v9 = vshrl.u32 %v3724_v45, 16  ;;  %v295_v10 = vshll.u32 %v3724_v45, 16  ;;  %v301_v16 = vshll.u32 %v3729_v56, 16  ;;  %v305_v28 = vshrl.u32 %v3729_v56, 16  ;;  %v3865_v36 = vld [vmem:[%s3546_s11 + $0x58] sm:$0xf] }
  0x4c   : > { %3057 = vmatprep.mubr.msk.bf16.mxu0 %vm949_vm1, %v2810_v47  ;;  %v2811_v29 = vcombine.low %v3827_v8, %v3830_v61  ;;  %v2734_v30 = vcombine.low %v3835_v2, %v3838_v34  ;;  %v316_v45 = vshrl.u32 %v3754_v25, 16  ;;  %v319_v37 = vshll.u32 %v3754_v25, 16  ;;  %v3881_v25 = vld [vmem:[%s4321_s1 + $0x10] sm:$0x3] }
  0x4d   : > { %v325_v39 = vshll.u32 %v3757_v27, 16  ;;  %v2812_v56 = vcombine.low %v3850_v11, %v3853_v14  ;;  %v283_v42 = vrot.slane %v281_v7, 4  ;;  %v3873_v47 = vrot.slane %v292_v9, 4  ;;  %v3887_v50 = vld [vmem:[%s3546_s11 + $0x30] sm:$0xf] }
  0x4e   : > { %v3875_v43 = vrot.slane %v295_v10, 5  ;;  %v329_v44 = vshrl.u32 %v3757_v27, 16  ;;  %v2735_v46 = vcombine.low %v3862_v13, %v3865_v36  ;;  %v3892_v7 = vrot.slane %v301_v16, 5  ;;  %v232_v9 = vld [vmem:[%s3546_s11 + $0x8] sm:$0x1] }
  0x4f   : > { %v340_v27 = vshrl.u32 %v3779_v5, 16  ;;  %v3897_v10 = vrot.slane %v305_v28, 4  ;;  %v3903_v54 = vrot.slane %v325_v39, 5  ;;  %v260_v16 = vor.u32 %v259_v22, %v3823_v32  ;;  %v233_v39 = vld [vmem:[%s3546_s11 + $0x14] sm:$0x1] }
  0x50   : > { %2976 = vmatmul.mubr.msk.bf16.gmra.mrb[8].mxu1 %vm949_vm1, %v2733_v60  ;;  %v3890_v60 = vld [vmem:[%s3546_s11 + $0x34] sm:$0xf]  ;;  %v3915_v28 = vrot.slane %v329_v44, 4  ;;  %v364_v55 = vshrl.u32 %v3801_v40, 16  ;;  %v377_v12 = vshrl.u32 %v3804_v41, 16 }
  0x51   : > { %2979 = vmatprep.mubr.msk.bf16.mxu1 %vm949_vm1, %v2734_v30  ;;  %v3901_v30 = vrot.slane %v319_v37, 5  ;;  %v263_v37 = vshll.u32 %v232_v9, 16  ;;  %v3920_v17 = vrot.slane %v340_v27, 4  ;;  %v261_v52 = vrot.slane %v260_v16, 4 }
  0x52   : > { %v367_v9 = vshll.u32 %v3801_v40, 16  ;;  %v287_v40 = vshll.u32 %v233_v39, 16  ;;  %v3954_v39 = vrot.slane %v364_v55, 4  ;;  %v298_v55 = vor.u32 %v3875_v43, %v3873_v47 }
  0x53   : > { %3058 = vmatmul.mubr.msk.bf16.vlgmr.msra.gmra.mrb[0].mxu0 %vm949_vm1, %v2811_v29  ;;  %v3899_v29 = vrot.slane %v316_v45, 4  ;;  %v2813_v45 = vcombine.low %v3887_v50, %v3890_v60  ;;  %v265_v22 = vrot.slane %v263_v37, 5  ;;  %v284_v37 = vor.u32 %v283_v42, %v3844_v4 }
  0x54   : > { %3074 = vmatpush3.bf16.msra.mxu0 %v2190_v49  ;;  %3061 = vmatprep.mubr.msk.bf16.mxu0 %vm949_vm1, %v2812_v56  ;;  %v250_v49 = vor.u32 %v249_v58, %v246_v51  ;;  %v3913_v56 = vld [vmem:[%s3546_s11 + $0x40] sm:$0xf]  ;;  %v349_v51 = vshll.u32 %v3782_v6, 16  ;;  %v353_v58 = vshrl.u32 %v3782_v6, 16  ;;  %v373_v6 = vshll.u32 %v3804_v41, 16 }
  0x55   : > { %3248 = vmatprep.subr.msk.bf16.mxu0 %vm974_vm0, %v3881_v25  ;;  %v2814_v44 = vcombine.low %v3907_v33, %v3913_v56  ;;  %v266_v16 = vsel %vm3615_vm4, %v261_v52, %v265_v22  ;;  %v289_v3 = vrot.slane %v287_v40, 5  ;;  %v234_v52 = vld [vmem:[%s3546_s11 + $0x20] sm:$0x1]  ;;  %v3956_v41 = vrot.slane %v367_v9, 5  ;;  %v3974_v9 = vld [vmem:[%s3546_s11 + $0x58] sm:$0xf] }
  0x56   : > { %v251_v26 = vrot.slane %v250_v49, 4  ;;  %v3935_v49 = vld [vmem:[%s3546_s11 + $0x48] sm:$0xf]  ;;  %v3949_v19 = vrot.slane %v349_v51, 5  ;;  %v3952_v42 = vrot.slane %v353_v58, 4  ;;  %v3965_v51 = vrot.slane %v373_v6, 5 }
  0x57   : > { %4347 = vst [vmem:[#allocation13_spill] sm:$0xff] %v3974_v9  ;;  %v311_v6 = vshll.u32 %v234_v52, 16  ;;  %v397_v40 = vshll.u32 %v3838_v34, 16  ;;  %v401_v47 = vshrl.u32 %v3838_v34, 16  ;;  %v415_v52 = vshll.u32 %v3862_v13, 16 }
  0x58   : > { %2980 = vmatmul.mubr.msk.bf16.gmra.mrb[12].mxu1 %vm949_vm1, %v2735_v46  ;;  %v343_v46 = vshll.u32 %v3779_v5, 16  ;;  %v256_v27 = vsel %vm3615_vm4, %v251_v26, %v3823_v32  ;;  %v274_v5 = vor.u32 %v3842_v0, %v3840_v63  ;;  %v3945_v63 = vld [vmem:[%s3546_s11 + $0x4c] sm:$0xf] }
  0x59   : > { %v2744_v26 = vcombine.low %v256_v27, %v266_v16  ;;  %v2815_v58 = vcombine.low %v3935_v49, %v3945_v63  ;;  %v3976_v27 = vrot.slane %v377_v12, 4  ;;  %v235_v16 = vld [vmem:[%s3546_s11 + $0x2c] sm:$0x1]  ;;  %v313_v43 = vrot.slane %v311_v6, 5 }
  0x5a   : > { %v275_v32 = vrot.slane %v274_v5, 4  ;;  %v3947_v0 = vrot.slane %v343_v46, 5  ;;  %v3963_v46 = vld [vmem:[%s3546_s11 + $0x54] sm:$0xf] }
  0x5b   : > { %3062 = vmatmul.mubr.msk.bf16.gmra.mrb[4].mxu0 %vm949_vm1, %v2813_v45  ;;  %v285_v45 = vrot.slane %v284_v37, 4  ;;  %2985 = vmatprep.mubr.msk.bf16.mxu1 %vm949_vm1, %v2744_v26  ;;  %4346 = vst [vmem:[#allocation12_spill] sm:$0xff] %v3963_v46  ;;  %v388_v37 = vshrl.u32 %v3835_v2, 16  ;;  %v299_v26 = vrot.slane %v298_v55, 4  ;;  %v332_v55 = vor.u32 %v3915_v28, %v3903_v54 }
  0x5c   : > { %3065 = vmatprep.mubr.msk.bf16.mxu0 %vm949_vm1, %v2814_v44  ;;  %v280_v22 = vsel %vm3615_vm4, %v275_v32, %v3844_v4  ;;  %v308_v4 = vor.u32 %v3897_v10, %v3892_v7  ;;  %v2816_v10 = vcombine.low %v3963_v46, %v3974_v9  ;;  %v3989_v32 = vld [vmem:[%s3546_s11 + $0x60] sm:$0xf]  ;;  %v417_v46 = vrot.slane %v415_v52, 5 }
  0x5d   : > { %v290_v44 = vsel %vm3615_vm4, %v285_v45, %v289_v3  ;;  %v391_v3 = vshll.u32 %v3835_v2, 16  ;;  %v412_v45 = vshrl.u32 %v3862_v13, 16  ;;  %v421_v2 = vshll.u32 %v3865_v36, 16 }
  0x5e   : > { %v2745_v5 = vcombine.low %v280_v22, %v290_v44  ;;  %v309_v12 = vrot.slane %v308_v4, 4  ;;  %v304_v34 = vsel %vm3615_vm4, %v299_v26, %v3892_v7  ;;  %v4000_v22 = vld [vmem:[%s3546_s11 + $0x64] sm:$0xf]  ;;  %v322_v13 = vor.u32 %v3901_v30, %v3899_v29 }
  0x5f   : > { %v393_v7 = vrot.slane %v391_v3, 5  ;;  %v399_v4 = vrot.slane %v397_v40, 5  ;;  %v237_v26 = vld [vmem:[%s3546_s11 + $0x44] sm:$0x1]  ;;  %v403_v29 = vrot.slane %v401_v47, 4  ;;  %v414_v30 = vrot.slane %v412_v45, 4 }
  0x60   : > { %2986 = vmatmul.mubr.msk.bf16.vlgmr.msra.gmra.mrb[0].mxu1 %vm949_vm1, %v2745_v5  ;;  %v314_v44 = vsel %vm3615_vm4, %v309_v12, %v313_v43  ;;  %v236_v5 = vld [vmem:[%s3546_s11 + $0x38] sm:$0x1]  ;;  %v425_v12 = vshrl.u32 %v3865_v36, 16  ;;  %v323_v43 = vrot.slane %v322_v13, 4  ;;  %v423_v28 = vrot.slane %v421_v2, 5 }
  0x61   : > { %3002 = vmatpush3.bf16.msra.mxu1 %v3821_v18  ;;  %v335_v18 = vshll.u32 %v235_v16, 16  ;;  %v2746_v6 = vcombine.low %v304_v34, %v314_v44  ;;  %v3339_v3 = vld [vmem:[%s3546_s11 + $0x78] sm:$0xff]   ;;  %v356_v47 = vor.u32 %v3952_v42, %v3949_v19  ;;  %v359_v45 = vshll.u32 %v236_v5, 16  ;;  %v238_v13 = vld [vmem:[%s3546_s11 + $0x50] sm:$0x1] }
  0x62   : > { %3244 = vmatprep.subr.msk.bf16.mxu1 %vm974_vm0, %v3523_v1  ;;  %v2817_v1 = vcombine.low %v3989_v32, %v4000_v22  ;;  %v328_v16 = vsel %vm3615_vm4, %v323_v43, %v3903_v54  ;;  %v370_v52 = vor.u32 %v3956_v41, %v3954_v39  ;;  %v427_v2 = vrot.slane %v425_v12, 4 }
  0x63   : > { %3066 = vmatmul.mubr.msk.bf16.gmra.mrb[8].mxu0 %vm949_vm1, %v2815_v58  ;;  %v390_v58 = vrot.slane %v388_v37, 4  ;;  %v337_v9 = vrot.slane %v335_v18, 5  ;;  %2989 = vmatprep.mubr.msk.bf16.mxu1 %vm949_vm1, %v2746_v6  ;;  %v346_v37 = vor.u32 %v3947_v0, %v3920_v17  ;;  %v380_v54 = vor.u32 %v3976_v27, %v3965_v51 }
  0x64   : > { %3069 = vmatprep.mubr.msk.bf16.mxu0 %vm949_vm1, %v2816_v10  ;;  %v333_v10 = vrot.slane %v332_v55, 4  ;;  %v383_v44 = vshll.u32 %v237_v26, 16  ;;  %v357_v17 = vrot.slane %v356_v47, 4  ;;  %v361_v0 = vrot.slane %v359_v45, 5  ;;  %v3341_v47 = vld [vmem:[%s3546_s11 + $0x90] sm:$0xff]  }
  0x65   : > { %v347_v34 = vrot.slane %v346_v37, 4  ;;  %v394_v42 = vor.u32 %v393_v7, %v390_v58  ;;  %v381_v41 = vrot.slane %v380_v54, 4  ;;  %v404_v55 = vor.u32 %v403_v29, %v399_v4  ;;  %v239_v58 = vld [vmem:[%s3546_s11 + $0x5c] sm:$0x1] }
  0x66   : > { %v338_v36 = vsel %vm3615_vm4, %v333_v10, %v337_v9  ;;  %v371_v9 = vrot.slane %v370_v52, 4  ;;  %v385_v27 = vrot.slane %v383_v44, 5  ;;  %v362_v18 = vsel %vm3615_vm4, %v357_v17, %v361_v0 }
  0x67   : > { %v2747_v40 = vcombine.low %v328_v16, %v338_v36  ;;  %v352_v39 = vsel %vm3615_vm4, %v347_v34, %v3949_v19  ;;  %v395_v6 = vrot.slane %v394_v42, 4  ;;  %v407_v26 = vshll.u32 %v238_v13, 16  ;;  %v3342_v13 = vld [vmem:[%s3546_s11 + $0x9c] sm:$0xff]  }
  0x68   : > { %v376_v5 = vsel %vm3615_vm4, %v371_v9, %v3965_v51  ;;  %v2748_v7 = vcombine.low %v352_v39, %v362_v18  ;;  %v386_v19 = vsel %vm3615_vm4, %v381_v41, %v385_v27  ;;  %v405_v12 = vrot.slane %v404_v55, 4  ;;  %v3344_v9 = vld [vmem:[%s3546_s11 + $0xa8] sm:$0xff]   ;;  %v2703_v55 = vld [vmem:[%s3546_s11 + $0x14] sm:$0x1] }
  0x69   : > { %2990 = vmatmul.mubr.msk.bf16.gmra.mrb[4].mxu1 %vm949_vm1, %v2747_v40  ;;  %v418_v43 = vor.u32 %v417_v46, %v414_v30  ;;  %v2749_v10 = vcombine.low %v376_v5, %v386_v19  ;;  %v400_v29 = vsel %vm3615_vm4, %v395_v6, %v399_v4  ;;  %v409_v16 = vrot.slane %v407_v26, 5 }
  0x6a   : > { %v428_v36 = vor.u32 %v427_v2, %v423_v28  ;;  %2993 = vmatprep.mubr.msk.bf16.mxu1 %vm949_vm1, %v2748_v7  ;;  %v431_v37 = vshll.u32 %v239_v58, 16  ;;  %v712_v4 = vshrl.u32 %v3788_v20, 16  ;;  %v715_v52 = vshll.u32 %v3788_v20, 16 }
  0x6b   : > { %3070 = vmatmul.mubr.msk.bf16.gmra.mrb[12].mxu0 %vm949_vm1, %v2817_v1  ;;  %v3340_v1 = vld [vmem:[%s3546_s11 + $0x84] sm:$0xff]   ;;  %v419_v51 = vrot.slane %v418_v43, 4  ;;  %v410_v40 = vsel %vm3615_vm4, %v405_v12, %v409_v16  ;;  %v721_v34 = vshll.u32 %v3791_v21, 16  ;;  %v725_v54 = vshrl.u32 %v3791_v21, 16  ;;  %v3346_v16 = vld [vmem:[%s3546_s11 + $0xb4] sm:$0xff]  }
  0x6c   : > { %3075 = vmatprep.mubr.msk.bf16.mxu0 %vm949_vm1, %v3339_v3  ;;  %v2355_v3 = vsel %vm974_vm0, %v3881_v25, 0  ;;  %v429_v45 = vrot.slane %v428_v36, 4  ;;  %v2750_v46 = vcombine.low %v400_v29, %v410_v40  ;;  %v433_v30 = vrot.slane %v431_v37, 5  ;;  %v3348_v37 = vld [vmem:[%s3546_s11 + $0xc0] sm:$0xff]  }
  0x6d   : > { %v424_v25 = vsel %vm3615_vm4, %v419_v51, %v423_v28  ;;  %v2766_v44 = vcombine.low %v3732_v57, %v3738_v62  ;;  %v714_v17 = vrot.slane %v712_v4, 4  ;;  %v717_v0 = vrot.slane %v715_v52, 5 }
  0x6e   : > { %v434_v2 = vsel %vm3615_vm4, %v429_v45, %v433_v30  ;;  %v2767_v28 = vcombine.low %v3760_v35, %v3763_v15  ;;  %v4073_v42 = vrot.slane %v721_v34, 5  ;;  %v727_v39 = vrot.slane %v725_v54, 4  ;;  %v2704_v30 = vld [vmem:[%s3546_s11 + $0x20] sm:$0x1] }
  0x6f   : > { %v2751_v20 = vcombine.low %v424_v25, %v434_v2  ;;  %v736_v41 = vshrl.u32 %v3827_v8, 16  ;;  %v739_v21 = vshll.u32 %v3827_v8, 16  ;;  %v745_v27 = vshll.u32 %v3830_v61, 16 }
  0x70   : > { %v749_v18 = vshrl.u32 %v3830_v61, 16  ;;  %v760_v5 = vshrl.u32 %v3850_v11, 16  ;;  %v763_v6 = vshll.u32 %v3850_v11, 16  ;;  %v4348_v26 = vcombine.low %v3586_v23, %v3589_v24 }
  0x71   : > { %2994 = vmatmul.mubr.msk.bf16.gmra.mrb[8].mxu1 %vm949_vm1, %v2749_v10  ;;  %v718_v8 = vor.u32 %v717_v0, %v714_v17  ;;  %v769_v58 = vshll.u32 %v3853_v14, 16  ;;  %v773_v61 = vshrl.u32 %v3853_v14, 16  ;;  %v728_v7 = vor.u32 %v727_v39, %v4073_v42 }
  0x72   : > { %2997 = vmatprep.mubr.msk.bf16.mxu1 %vm949_vm1, %v2750_v46  ;;  %v731_v19 = vshll.u32 %v2703_v55, 16  ;;  %v738_v12 = vrot.slane %v736_v41, 4  ;;  %v741_v43 = vrot.slane %v739_v21, 5  ;;  %v4092_v11 = vrot.slane %v745_v27, 5 }
  0x73   : > { %3076 = vmatmul.mubr.msk.bf16.vlgmr.msra.gmra.mrb[0].mxu0 %vm949_vm1, %v3340_v1  ;;  %v784_v23 = vshrl.u32 %v3887_v50, 16  ;;  %v751_v24 = vrot.slane %v749_v18, 4  ;;  %v762_v10 = vrot.slane %v760_v5, 4  ;;  %v787_v1 = vshll.u32 %v3887_v50, 16  ;;  %v4351_v18 = vld [vmem:[#allocation7_spill] sm:$0xff]  ;;  %v4352_v5 = vld [vmem:[#allocation6_spill] sm:$0xff] }
  0x74   : > { %3092 = vmatpush3.bf16.msra.mxu0 %v2355_v3  ;;  %3079 = vmatprep.mubr.msk.bf16.mxu0 %vm949_vm1, %v3341_v47  ;;  %v793_v29 = vshll.u32 %v3890_v60, 16  ;;  %v765_v36 = vrot.slane %v763_v6, 5  ;;  %v797_v14 = vshrl.u32 %v3890_v60, 16  ;;  %v2762_v51 = vcombine.low %v3621_v53, %v3626_v59  ;;  %v2705_v60 = vld [vmem:[%s3546_s11 + $0x2c] sm:$0x1] }
  0x75   : > { %v719_v3 = vrot.slane %v718_v8, 4  ;;  %v4102_v40 = vrot.slane %v769_v58, 5  ;;  %v775_v47 = vrot.slane %v773_v61, 4  ;;  %v729_v45 = vrot.slane %v728_v7, 4  ;;  %v4353_v58 = vld [vmem:[#allocation9_spill] sm:$0xff]  ;;  %v4354_v61 = vld [vmem:[#allocation8_spill] sm:$0xff] }
  0x76   : > { %v733_v46 = vrot.slane %v731_v19, 5  ;;  %v4105_v4 = vrot.slane %v784_v23, 4  ;;  %v808_v50 = vshrl.u32 %v3907_v33, 16  ;;  %v811_v52 = vshll.u32 %v3907_v33, 16 }
  0x77   : > { %v817_v25 = vshll.u32 %v3913_v56, 16  ;;  %v4111_v2 = vrot.slane %v787_v1, 5  ;;  %v4113_v53 = vrot.slane %v793_v29, 5  ;;  %v821_v59 = vshrl.u32 %v3913_v56, 16  ;;  %v2706_v29 = vld [vmem:[%s3546_s11 + $0x38] sm:$0x1] }
  0x78   : > { %v4349_v34 = vcombine.low %v3597_v31, %v3604_v38  ;;  %v742_v54 = vor.u32 %v741_v43, %v738_v12  ;;  %v724_v33 = vsel %vm3615_vm4, %v719_v3, %v4073_v42  ;;  %v752_v56 = vor.u32 %v751_v24, %v4092_v11  ;;  %v4356_v3 = vld [vmem:[#allocation13_spill] sm:$0xff] }
  0x79   : > { %2998 = vmatmul.mubr.msk.bf16.gmra.mrb[12].mxu1 %vm949_vm1, %v2751_v20  ;;  %v799_v20 = vrot.slane %v797_v14, 4  ;;  %v755_v17 = vshll.u32 %v2704_v30, 16  ;;  %v734_v31 = vsel %vm3615_vm4, %v729_v45, %v733_v46  ;;  %v766_v38 = vor.u32 %v765_v36, %v762_v10  ;;  %v4355_v36 = vld [vmem:[#allocation12_spill] sm:$0xff] }
  0x7a   : > { %3003 = vmatprep.mubr.msk.bf16.mxu1 %vm949_vm1, %v4348_v26  ;;  %v776_v0 = vor.u32 %v775_v47, %v4102_v40  ;;  %v810_v39 = vrot.slane %v808_v50, 4  ;;  %v813_v41 = vrot.slane %v811_v52, 5  ;;  %v4131_v21 = vrot.slane %v817_v25, 5  ;;  %v3350_v26 = vld [vmem:[%s3546_s11 + $0xcc] sm:$0xff]  }
  0x7b   : > { %3080 = vmatmul.mubr.msk.bf16.gmra.mrb[4].mxu0 %vm949_vm1, %v3342_v13  ;;  %v4350_v13 = vld [vmem:[#allocation5_spill] sm:$0xff]  ;;  %v832_v27 = vshrl.u32 %v3935_v49, 16  ;;  %v823_v42 = vrot.slane %v821_v59, 4  ;;  %v835_v55 = vshll.u32 %v3935_v49, 16  ;;  %v2763_v6 = vcombine.low %v4352_v5, %v4351_v18 }
  0x7c   : > { %3083 = vmatprep.mubr.msk.bf16.mxu0 %vm949_vm1, %v3344_v9  ;;  %v779_v9 = vshll.u32 %v2705_v60, 16  ;;  %v743_v8 = vrot.slane %v742_v54, 4  ;;  %v2764_v7 = vcombine.low %v4354_v61, %v4353_v58  ;;  %v2843_v19 = vcombine.low %v724_v33, %v734_v31 }
  0x7d   : > { %v753_v12 = vrot.slane %v752_v56, 4  ;;  %v757_v43 = vrot.slane %v755_v17, 5  ;;  %v841_v23 = vshll.u32 %v3945_v63, 16  ;;  %v767_v24 = vrot.slane %v766_v38, 4  ;;  %v4358_v56 = vld [vmem:[#allocation10_spill] sm:$0xff] }
  0x7e   : > { %v777_v10 = vrot.slane %v776_v0, 4  ;;  %v781_v1 = vrot.slane %v779_v9, 5  ;;  %v845_v49 = vshrl.u32 %v3945_v63, 16  ;;  %v856_v14 = vshrl.u32 %v4355_v36, 16 }
  0x7f   : > { %v865_v47 = vshll.u32 %v4356_v3, 16  ;;  %v869_v45 = vshrl.u32 %v4356_v3, 16  ;;  %v748_v46 = vsel %vm3615_vm4, %v743_v8, %v4092_v11  ;;  %v790_v63 = vor.u32 %v4111_v2, %v4105_v4  ;;  %v2710_v3 = vld [vmem:[%s3546_s11 + $0x68] sm:$0x1] }
  0x80   : > { %v758_v30 = vsel %vm3615_vm4, %v753_v12, %v757_v43  ;;  %v800_v50 = vor.u32 %v799_v20, %v4113_v53  ;;  %v803_v52 = vshll.u32 %v2706_v29, 16  ;;  %v814_v25 = vor.u32 %v813_v41, %v810_v39  ;;  %v4357_v20 = vld [vmem:[#allocation11_spill] sm:$0xff] }
  0x81   : > { %3004 = vmatmul.mubr.msk.bf16.vlgmr.msra.gmra.mrb[0].mxu1 %vm949_vm1, %v4349_v34  ;;  %v772_v60 = vsel %vm3615_vm4, %v767_v24, %v4102_v40  ;;  %v782_v11 = vsel %vm3615_vm4, %v777_v10, %v781_v1  ;;  %v824_v4 = vor.u32 %v823_v42, %v4131_v21  ;;  %v837_v59 = vrot.slane %v835_v55, 5  ;;  %v2708_v55 = vld [vmem:[%s3546_s11 + $0x50] sm:$0x1] }
  0x82   : > { %3110 = vmatpush3.bf16.msra.mxu1 %v4350_v13  ;;  %3007 = vmatprep.mubr.msk.bf16.mxu1 %vm949_vm1, %v2762_v51  ;;  %v859_v51 = vshll.u32 %v4355_v36, 16  ;;  %v843_v34 = vrot.slane %v841_v23, 5  ;;  %v847_v54 = vrot.slane %v845_v49, 4  ;;  %v858_v13 = vrot.slane %v856_v14, 4 }
  0x83   : > { %3084 = vmatmul.mubr.msk.bf16.gmra.mrb[8].mxu0 %vm949_vm1, %v3346_v16  ;;  %v834_v16 = vrot.slane %v832_v27, 4  ;;  %v2765_v17 = vcombine.low %v4358_v56, %v4357_v20  ;;  %v2844_v31 = vcombine.low %v748_v46, %v758_v30  ;;  %v791_v38 = vrot.slane %v790_v63, 4 }
  0x84   : > { %3087 = vmatprep.mubr.msk.bf16.mxu0 %vm949_vm1, %v3348_v37  ;;  %v2707_v37 = vld [vmem:[%s3546_s11 + $0x44] sm:$0x1]  ;;  %v861_v33 = vrot.slane %v859_v51, 5  ;;  %v2845_v0 = vcombine.low %v772_v60, %v782_v11  ;;  %v801_v40 = vrot.slane %v800_v50, 4  ;;  %v805_v9 = vrot.slane %v803_v52, 5  ;;  %v3357_v52 = vld [vmem:[%s3546_s11 + $0x18c] sm:$0xff]  }
  0x85   : > { %v827_v2 = vshll.u32 %v2707_v37, 16  ;;  %v815_v39 = vrot.slane %v814_v25, 4  ;;  %v867_v41 = vrot.slane %v865_v47, 5  ;;  %v871_v27 = vrot.slane %v869_v45, 4 }
  0x86   : > { %v825_v42 = vrot.slane %v824_v4, 4  ;;  %v880_v5 = vshrl.u32 %v3989_v32, 16  ;;  %v889_v8 = vshll.u32 %v4000_v22, 16  ;;  %v893_v58 = vshrl.u32 %v4000_v22, 16 }
  0x87   : > { %v829_v18 = vrot.slane %v827_v2, 5  ;;  %v796_v61 = vsel %vm3615_vm4, %v791_v38, %v4113_v53  ;;  %v820_v22 = vsel %vm3615_vm4, %v815_v39, %v4131_v21  ;;  %v851_v12 = vshll.u32 %v2708_v55, 16 }
  0x88   : > { %v862_v43 = vor.u32 %v861_v33, %v858_v13  ;;  %v872_v57 = vor.u32 %v871_v27, %v867_v41  ;;  %v891_v24 = vrot.slane %v889_v8, 5  ;;  %v895_v29 = vrot.slane %v893_v58, 4 }
  0x89   : > { %3008 = vmatmul.mubr.msk.bf16.gmra.mrb[4].mxu1 %vm949_vm1, %v2763_v6  ;;  %v883_v6 = vshll.u32 %v3989_v32, 16  ;;  %v806_v32 = vsel %vm3615_vm4, %v801_v40, %v805_v9  ;;  %v830_v53 = vsel %vm3615_vm4, %v825_v42, %v829_v18  ;;  %v853_v14 = vrot.slane %v851_v12, 5 }
  0x8a   : > { %3011 = vmatprep.mubr.msk.bf16.mxu1 %vm949_vm1, %v2764_v7  ;;  %v838_v7 = vor.u32 %v837_v59, %v834_v16  ;;  %v2846_v10 = vcombine.low %v796_v61, %v806_v32  ;;  %v3355_v16 = vld [vmem:[%s3546_s11 + $0x174] sm:$0xff]   ;;  %v2847_v49 = vcombine.low %v820_v22, %v830_v53  ;;  %v863_v21 = vrot.slane %v862_v43, 4 }
  0x8b   : > { %3088 = vmatmul.mubr.msk.bf16.gmra.mrb[12].mxu0 %vm949_vm1, %v3350_v26  ;;  %v2709_v26 = vld [vmem:[%s3546_s11 + $0x5c] sm:$0x1]  ;;  %v885_v23 = vrot.slane %v883_v6, 5  ;;  %v873_v51 = vrot.slane %v872_v57, 4  ;;  %v896_v63 = vor.u32 %v895_v29, %v891_v24  ;;  %v899_v30 = vshll.u32 %v2710_v3, 16 }
  0x8c   : > { %3093 = vmatprep.mubr.msk.bf16.mxu0 %vm949_vm1, %v2843_v19  ;;  %v848_v19 = vor.u32 %v847_v54, %v843_v34  ;;  %v875_v62 = vshll.u32 %v2709_v26, 16  ;;  %v839_v1 = vrot.slane %v838_v7, 4  ;;  %v868_v35 = vsel %vm3615_vm4, %v863_v21, %v867_v41 }
  0x8d   : > { %v897_v11 = vrot.slane %v896_v63, 4  ;;  %v901_v4 = vrot.slane %v899_v30, 5 }
  0x8e   : > { %v849_v36 = vrot.slane %v848_v19, 4  ;;  %v877_v37 = vrot.slane %v875_v62, 5  ;;  %v844_v47 = vsel %vm3615_vm4, %v839_v1, %v843_v34  ;;  %v3358_v34 = vld [vmem:[%s3546_s11 + $0x198] sm:$0xff]  }
  0x8f   : > { %v902_v59 = vsel %vm3615_vm4, %v897_v11, %v901_v4 }
  0x90   : > { %v854_v45 = vsel %vm3615_vm4, %v849_v36, %v853_v14  ;;  %v878_v15 = vsel %vm3615_vm4, %v873_v51, %v877_v37 }
  0x91   : > { %3012 = vmatmul.mubr.msk.bf16.gmra.mrb[8].mxu1 %vm949_vm1, %v2765_v17  ;;  %v2848_v50 = vcombine.low %v844_v47, %v854_v45  ;;  %v2849_v25 = vcombine.low %v868_v35, %v878_v15 }
  0x92   : > { %3015 = vmatprep.mubr.msk.bf16.mxu1 %vm949_vm1, %v2766_v44  ;;  %v882_v44 = vrot.slane %v880_v5, 4 }
  0x93   : > { %3094 = vmatmul.mubr.msk.bf16.vlgmr.msra.gmra.mrb[0].mxu0 %vm949_vm1, %v2844_v31 }
  0x94   : > { %3097 = vmatprep.mubr.msk.bf16.mxu0 %vm949_vm1, %v2845_v0  ;;  %v886_v46 = vor.u32 %v885_v23, %v882_v44 }
  0x96   : > { %v887_v60 = vrot.slane %v886_v46, 4 }
  0x98   : > { %v892_v2 = vsel %vm3615_vm4, %v887_v60, %v891_v24 }
  0x99   : > { %3016 = vmatmul.mubr.msk.bf16.gmra.mrb[12].mxu1 %vm949_vm1, %v2767_v28  ;;  %v3356_v28 = vld [vmem:[%s3546_s11 + $0x180] sm:$0xff]   ;;  %v2850_v54 = vcombine.low %v892_v2, %v902_v59  ;;  %s2526_s11 = sshll.u32 %s4231_s9, 4  ;;  %s4266_s11 = int_to_ptr.vmem [resolvable:$true] %s2526_s11 }
  0x9a   : > { %3029 = vmatprep.mubr.msk.bf16.mxu1 %vm949_vm1, %v3355_v16  ;;  %s3359_s23 = scalar_lea.vmem %s4266_s11, 2048  ;;  %p3366_p1 = scmp.lt.s32.totalorder %s4266_s11, %s3364_s27 }
  0x9b   : > { %3098 = vmatmul.mubr.msk.bf16.gmra.mrb[4].mxu0 %vm949_vm1, %v2846_v10  ;;  %p3360_p12 = scmp.ne.s32.totalorder %s4266_s11, %s3359_s23  ;;  %p3367_p2 = scmp.lt.s32.totalorder %s3365_s28, %s3359_s23 }
  0x9c   : > { %3101 = vmatprep.mubr.msk.bf16.mxu0 %vm949_vm1, %v2847_v49 }
  0x9d   : > { %p3361_p13 = pnand %p3360_p12, %p3502_p4  ;;  %p3368_p3 = por %p3367_p2, %p3366_p1 }
  0x9f   : > { %p3362_p0 = pneg %p3361_p13 }
  0xa1   : > { %3030 = vmatmul.mubr.msk.bf16.vlgmr.msra.gmra.mrb[8].mxu1 %vm949_vm1, %v3356_v28  ;;  %p3369_p5 = pnand %p3368_p3, %p3362_p0 }
  0xa2   : > { %3033 = vmatprep.mubr.msk.bf16.mxu1 %vm949_vm1, %v3357_v52 }
  0xa3   : > { %3102 = vmatmul.mubr.msk.bf16.gmra.mrb[8].mxu0 %vm949_vm1, %v2848_v50 }
  0xa4   : > { %3105 = vmatprep.mubr.msk.bf16.mxu0 %vm949_vm1, %v2849_v25 }
  0xa9   : > { %3034 = vmatmul.mubr.msk.bf16.gmra.mrb[12].mxu1 %vm949_vm1, %v3358_v34 }
  0xab   : > { %3106 = vmatmul.mubr.msk.bf16.gmra.mrb[12].mxu0 %vm949_vm1, %v2850_v54 }
 0x154   : > { %v3005_v13 = vpop.f32.mrb[0].mxu1 }
 0x155   : > { %v1510_v33 = vpop.f32.mrb[1].mxu1 }
 0x156   : > { %v3006_v20 = vpop.f32.mrb[2].mxu1 }
 0x157   : > { %v1513_v56 = vpop.f32.mrb[3].mxu1 }
 0x15c   : > { %v3009_v17 = vpop.f32.mrb[4].mxu1 }
 0x15d   : > { %v1526_v31 = vpop.f32.mrb[5].mxu1 }
 0x15e   : > { %v3010_v38 = vpop.f32.mrb[6].mxu1 }
 0x15f   : > { %v1529_v0 = vpop.f32.mrb[7].mxu1 }
 0x166   : > { %v3095_v40 = vpop.f32.mrb[0].mxu0 }
 0x167   : > { %v3111_v9 = vadd.f32 %v3095_v40, %v3005_v13  ;;  %v2391_v39 = vpop.f32.mrb[1].mxu0 }
 0x168   : > { %v3112_v41 = vadd.f32 %v2391_v39, %v1510_v33  ;;  %v3096_v27 = vpop.f32.mrb[2].mxu0 }
 0x169   : > { %v2479_v42 = vadd.f32 %v3111_v9, %v4227_v48  ;;  %v3113_v18 = vadd.f32 %v3096_v27, %v3006_v20  ;;  %v2394_v55 = vpop.f32.mrb[3].mxu0 }
 0x16a   : > { %v2477_v5 = vadd.f32 %v3112_v41, %v4227_v48  ;;  %v3114_v6 = vadd.f32 %v2394_v55, %v1513_v56 }
 0x16b   : > { %2495 = vst [vmem:[%s4231_s9 + $0x10] sm:$0xff] %v2479_v42  ;;  %v2480_v26 = vadd.f32 %v3113_v18, %v4227_v48 }
 0x16c   : > { %2493 = vst [vmem:[%s4231_s9] sm:$0xff] %v2477_v5  ;;  %v2478_v8 = vadd.f32 %v3114_v6, %v4227_v48 }
 0x16d   : > { %2496 = vst [vmem:[%s4231_s9 + $0x18] sm:$0xff] %v2480_v26 }
 0x16e   : > { %2494 = vst [vmem:[%s4231_s9 + $0x8] sm:$0xff] %v2478_v8  ;;  %v3099_v58 = vpop.f32.mrb[4].mxu0 }
 0x16f   : > { %v3115_v61 = vadd.f32 %v3099_v58, %v3009_v17  ;;  %v2407_v7 = vpop.f32.mrb[5].mxu0 }
 0x170   : > { %v3116_v32 = vadd.f32 %v2407_v7, %v1526_v31  ;;  %v3100_v22 = vpop.f32.mrb[6].mxu0 }
 0x171   : > { %v2483_v19 = vadd.f32 %v3115_v61, %v4227_v48  ;;  %v3117_v12 = vadd.f32 %v3100_v22, %v3010_v38  ;;  %v2410_v53 = vpop.f32.mrb[7].mxu0 }
 0x172   : > { %v2481_v43 = vadd.f32 %v3116_v32, %v4227_v48  ;;  %v3118_v57 = vadd.f32 %v2410_v53, %v1529_v0 }
 0x173   : > { %2499 = vst [vmem:[%s4231_s9 + $0x30] sm:$0xff] %v2483_v19  ;;  %v2484_v62 = vadd.f32 %v3117_v12, %v4227_v48 }
 0x174   : > { %2497 = vst [vmem:[%s4231_s9 + $0x20] sm:$0xff] %v2481_v43  ;;  %v2482_v44 = vadd.f32 %v3118_v57, %v4227_v48  ;;  %v3031_v23 = vpop.f32.mrb[8].mxu1 }
 0x175   : > { %2500 = vst [vmem:[%s4231_s9 + $0x38] sm:$0xff] %v2484_v62  ;;  %v1723_v1 = vpop.f32.mrb[9].mxu1 }
 0x176   : > { %2498 = vst [vmem:[%s4231_s9 + $0x28] sm:$0xff] %v2482_v44  ;;  %v3103_v24 = vpop.f32.mrb[8].mxu0  ;;  %v3032_v49 = vpop.f32.mrb[10].mxu1 }
 0x177   : > { %v3119_v10 = vadd.f32 %v3103_v24, %v3031_v23  ;;  %v2423_v29 = vpop.f32.mrb[9].mxu0  ;;  %v1726_v51 = vpop.f32.mrb[11].mxu1 }
 0x178   : > { %v3120_v16 = vadd.f32 %v2423_v29, %v1723_v1  ;;  %v3104_v36 = vpop.f32.mrb[10].mxu0 }
 0x179   : > { %v2487_v14 = vadd.f32 %v3119_v10, %v4227_v48  ;;  %v3121_v21 = vadd.f32 %v3104_v36, %v3032_v49  ;;  %v2426_v37 = vpop.f32.mrb[11].mxu0 }
 0x17a   : > { %v2485_v3 = vadd.f32 %v3120_v16, %v4227_v48  ;;  %v3122_v47 = vadd.f32 %v2426_v37, %v1726_v51 }
 0x17b   : > { %2503 = vst [vmem:[%s4231_s9 + $0x50] sm:$0xff] %v2487_v14  ;;  %v2488_v45 = vadd.f32 %v3121_v21, %v4227_v48 }
 0x17c   : > { %2501 = vst [vmem:[%s4231_s9 + $0x40] sm:$0xff] %v2485_v3  ;;  %v2486_v46 = vadd.f32 %v3122_v47, %v4227_v48  ;;  %v3035_v63 = vpop.f32.mrb[12].mxu1 }
 0x17d   : > { %2504 = vst [vmem:[%s4231_s9 + $0x58] sm:$0xff] %v2488_v45  ;;  %v1739_v15 = vpop.f32.mrb[13].mxu1 }
 0x17e   : > { %2502 = vst [vmem:[%s4231_s9 + $0x48] sm:$0xff] %v2486_v46  ;;  %v3107_v30 = vpop.f32.mrb[12].mxu0  ;;  %v3036_v52 = vpop.f32.mrb[14].mxu1 }
 0x17f   : > { %v3123_v35 = vadd.f32 %v3107_v30, %v3035_v63  ;;  %v2439_v28 = vpop.f32.mrb[13].mxu0  ;;  %v1742_v4 = vpop.f32.mrb[15].mxu1 }
 0x180   : > { %v3124_v50 = vadd.f32 %v2439_v28, %v1739_v15  ;;  %v3108_v25 = vpop.f32.mrb[14].mxu0 }
 0x181   : > { %v2491_v60 = vadd.f32 %v3123_v35, %v4227_v48  ;;  %v3125_v11 = vadd.f32 %v3108_v25, %v3036_v52  ;;  %v2442_v2 = vpop.f32.mrb[15].mxu0 }
 0x182   : > { %v2489_v59 = vadd.f32 %v3124_v50, %v4227_v48  ;;  %v3126_v34 = vadd.f32 %v2442_v2, %v1742_v4 }
 0x183   : > { %2507 = vst [vmem:[%s4231_s9 + $0x70] sm:$0xff] %v2491_v60  ;;  %v2492_v54 = vadd.f32 %v3125_v11, %v4227_v48 }
 0x184   : > { %2505 = vst [vmem:[%s4231_s9 + $0x60] sm:$0xff] %v2489_v59  ;;  %v2490_v13 = vadd.f32 %v3126_v34, %v4227_v48 }
 0x185   : > { %2508 = vst [vmem:[%s4231_s9 + $0x78] sm:$0xff] %v2492_v54 }
 0x186   : > { %2506 = vst [vmem:[%s4231_s9 + $0x68] sm:$0xff] %v2490_v13 }
 0x187   : > { %3372 = shalt.err (!%p3369_p5)
}
 0x188   : > { %s3373_s29 = scalar_lea.hbm %s4264_s21, 2048  ;;  %s3377_s5 = scalar_lea.hbm %s4323_s3, 4096 }
 0x189   : > { %p3374_p6 = scmp.ne.s32.totalorder %s4264_s21, %s3373_s29  ;;  %p3378_p10 = scmp.lt.u32.totalorder %s4264_s21, %s4323_s3 }
 0x18a   : > { %p3379_p11 = scmp.lt.u32.totalorder %s3377_s5, %s3373_s29  ;;  %p3381_p13 = scmp.lt.u32.totalorder %s3373_s29, %s4264_s21 }
 0x18b   : > { %p3375_p7 = pnand %p3374_p6, %p3502_p4 }
 0x18c   : > { %p3380_p12 = por %p3379_p11, %p3378_p10 }
 0x18d   : > { %p3376_p9 = pneg %p3375_p7 }
 0x18e   : > { %p3382_p0 = por %p3381_p13, %p3380_p12 }
 0x190   : > { %p3383_p1 = pnand %p3382_p0, %p3376_p9 }
 0x192   : > { %3386 = shalt.err (!%p3383_p1)
}
 0x193   : > { %s3440_s8 = smov 128   ;;  %s3441_s9 = smov 8  }
 0x194   : > { %3250 = dma.vmem_to_hbm [thread:$0]  (%p3502_p4), %s4266_s11, 2048, %s4264_s21, %s4274_s15, %s3440_s8, %s3440_s8, %s3441_s9  }
 0x195 PF: > { %p3256_p2 = scmp.ge.s32.totalorder %s3437_s17, 2  ;;  %s2541_s10 = sand.u32 1, %s3417_s12  }
 0x196   : > { %s2542_s18 = scalar_lea.sflag [#allocation3], %s2541_s10 }
 0x197   : > { %p3253_p3 = pnand %p3256_p2, %p3509_p8 }
 0x199   : > { %3412 = dma.done.wait (!%p3253_p3), %s2542_s18, 2048  }
 0x19a   : > { %3414 = vsyncadd (!%p3253_p3), %s2542_s18, 4294965248  ;;  %s16_s17 = sadd.s32 1, %s3437_s17   ;;  %s4359_s12 = smov %s3421_s13 }
 0x19b   : > { %p13_p5 = scmp.ge.s32.totalorder %s16_s17, 4   ;;  %s4360_s13 = smov %s3425_s14 }
 0x19c   : > { %s4361_s14 = smov %s3515_s25  ;;  %s4362_s15 = smov %s3433_s16 }
 0x19d   : > { %s4363_s16 = smov %s4365_s20  ;;  %15 = sbr.rel (!%p13_p5) target bundleno = 4 (0x4), region = 72 }
 0x1a4   :  { %2547 = vsyncpa [#allocation3], 1 }
 0x1a5   :  { %2549 = vsyncpa [#allocation3 + $0x1], 1 }

</bundles_post_ra>
